<compile_context>
chip_gen: v7x
topology: tpu7x:2x2x1
jax: 0.10.0
libtpu: 0.0.40
codegen_flags: <defaults>
</compile_context>

<pallas_src>
import functools
import math

import jax
import jax.numpy as jnp
from jax.experimental import pallas as pl
from jax.experimental.pallas import tpu as pltpu

BN_EPS = 1e-5


# ---------------------------------------------------------------------------
# VMEM budgeting / tile selection (generation aware)
# ---------------------------------------------------------------------------
def _vmem_limit_bytes():
    """64 MiB cap on v5e/v6e (128 MiB physical VMEM), 32 MiB on v7x (64 MiB physical)."""
    try:
        phys = int(pltpu.get_tpu_info().vmem_capacity_bytes)
    except Exception:
        phys = 64 << 20                      # conservative default (v7x per-TC VMEM)
    return int(max(16 << 20, min(phys // 2, 64 << 20)))


def _pick_tiles(B, width, T, vmem_limit, batch_tile=None, time_tile=None):
    """(tb, tT): the fused chain kernel streams 4 data-sized (tb, width, tT) f32
    buffers (x chunk, y_prev, out slab, y_i), each double-buffered -> 8x tile bytes."""
    n_bufs = 4 * 2
    bytes_per_row = n_bufs * width * 4
    data_budget = max(vmem_limit // 2, 4 << 20)

    if time_tile is not None:
        tT = int(time_tile)
        assert 0 < tT <= T and T % tT == 0 and (tT % 128 == 0 or tT == T), \
            "time_tile must divide T and be a multiple of 128 (or equal T)"
    else:
        tT = T
        if T % 128 == 0:                     # shrink T tile only if it keeps lane alignment
            while bytes_per_row * tT > data_budget and tT % 256 == 0:
                tT //= 2

    if batch_tile is not None:
        tb = max(1, min(int(batch_tile), B))
    else:
        tb = max(1, min(B, data_budget // (bytes_per_row * tT)))
    while B % tb:
        tb -= 1
    return tb, tT


# ---------------------------------------------------------------------------
# Kernels
# ---------------------------------------------------------------------------
def _conv_relu_stats_loop(cur_fn, w_ref, b_ref, y_ref, s_ref, sq_ref):
    """For each batch row b of the tile: y[b] = relu(W @ cur_fn(b) + bias);
    accumulate per-out-channel sum / sum-of-squares and emit per-tile partials."""
    tb, width, _ = y_ref.shape
    w = w_ref[...]                           # (width, width)
    bias = b_ref[...]                        # (width, 1)

    def body(bi, carry):
        s_acc, sq_acc = carry
        cur_b = cur_fn(bi)                                           # (width, tT)
        y_b = jnp.dot(w, cur_b, preferred_element_type=jnp.float32)  # MXU
        y_b = jnp.maximum(y_b + bias, 0.0)
        y_ref[bi] = y_b
        s_acc = s_acc + jnp.sum(y_b, axis=1, keepdims=True)          # XLU lane reduce
        sq_acc = sq_acc + jnp.sum(y_b * y_b, axis=1, keepdims=True)
        return s_acc, sq_acc

    init = (jnp.zeros((width, 1), jnp.float32), jnp.zeros((width, 1), jnp.float32))
    s, sq = jax.lax.fori_loop(0, tb, body, init, unroll=(tb <= 8))
    s_ref[0] = s
    sq_ref[0] = sq


def _first_branch_kernel(xc_ref, xlast_ref, w_ref, b_ref, out_ref, y_ref, s_ref, sq_ref):
    # Pass-through chunk spx[-1] -> its slab of the (B, C, T) output (fused copy).
    out_ref[...] = xlast_ref[...]
    _conv_relu_stats_loop(lambda bi: xc_ref[bi], w_ref, b_ref, y_ref, s_ref, sq_ref)


def _chain_branch_kernel(xc_ref, yprev_ref, sc_ref, sh_ref, w_ref, b_ref, carry_ref,
                         out_ref, y_ref, s_ref, sq_ref):
    del carry_ref                            # aliased output buffer; never read here
    sc = sc_ref[...]                         # (width, 1) folded BN scale of branch i-1
    sh = sh_ref[...]                         # (width, 1) folded BN shift of branch i-1

    def cur_fn(bi):
        sp_prev = yprev_ref[bi] * sc + sh    # BN affine of previous branch, (width, tT)
        out_ref[bi] = sp_prev                # previous branch's final output -> its slab
        return sp_prev + xc_ref[bi]          # residual add with this branch's chunk

    _conv_relu_stats_loop(cur_fn, w_ref, b_ref, y_ref, s_ref, sq_ref)


def _final_affine_kernel(y_ref, sc_ref, sh_ref, carry_ref, out_ref):
    del carry_ref
    out_ref[...] = y_ref[...] * sc_ref[...] + sh_ref[...]


# ---------------------------------------------------------------------------
# pallas_call wrappers
# ---------------------------------------------------------------------------
def _slab_spec(c, tb, width, tT):
    return pl.BlockSpec((tb, width, tT), lambda ib, it: (ib, c, it))


def _first_branch_call(x, w, b, *, scale, width, tb, tT, vmem_limit):
    B, C, T = x.shape
    nbt, ntt = B // tb, T // tT
    n_tiles = nbt * ntt

    y_spec = pl.BlockSpec((tb, width, tT), lambda ib, it: (ib, 0, it))
    mat_spec = pl.BlockSpec((width, width), lambda ib, it: (0, 0))
    col_spec = pl.BlockSpec((width, 1), lambda ib, it: (0, 0))
    stats_spec = pl.BlockSpec((1, width, 1), lambda ib, it: (ib * ntt + it, 0, 0))

    out_shape = (jax.ShapeDtypeStruct((B, C, T), jnp.float32),
                 jax.ShapeDtypeStruct((B, width, T), jnp.float32),
                 jax.ShapeDtypeStruct((n_tiles, width, 1), jnp.float32),
                 jax.ShapeDtypeStruct((n_tiles, width, 1), jnp.float32))

    n_data = B * width * T
    return pl.pallas_call(
        _first_branch_kernel,
        out_shape=out_shape,
        grid_spec=pl.GridSpec(
            grid=(nbt, ntt),
            in_specs=[_slab_spec(0, tb, width, tT),             # x chunk 0
                      _slab_spec(scale - 1, tb, width, tT),     # x pass-through chunk
                      mat_spec, col_spec],
            out_specs=[_slab_spec(scale - 1, tb, width, tT),    # out: pass-through slab
                       y_spec, stats_spec, stats_spec]),
        compiler_params=pltpu.CompilerParams(
            dimension_semantics=("parallel", "parallel"),
            vmem_limit_bytes=vmem_limit),
        cost_estimate=pl.CostEstimate(
            flops=2 * B * width * width * T + 5 * n_data, transcendentals=0,
            bytes_accessed=4 * (4 * n_data + width * width + width)),
    )(x, x, w, b)


def _chain_branch_call(x, y_prev, sc, sh, w, b, out_carry, *, branch, width, tb, tT,
                       vmem_limit):
    B, C, T = x.shape
    nbt, ntt = B // tb, T // tT
    n_tiles = nbt * ntt

    y_spec = pl.BlockSpec((tb, width, tT), lambda ib, it: (ib, 0, it))
    mat_spec = pl.BlockSpec((width, width), lambda ib, it: (0, 0))
    col_spec = pl.BlockSpec((width, 1), lambda ib, it: (0, 0))
    stats_spec = pl.BlockSpec((1, width, 1), lambda ib, it: (ib * ntt + it, 0, 0))

    out_shape = (jax.ShapeDtypeStruct((B, C, T), jnp.float32),
                 jax.ShapeDtypeStruct((B, width, T), jnp.float32),
                 jax.ShapeDtypeStruct((n_tiles, width, 1), jnp.float32),
                 jax.ShapeDtypeStruct((n_tiles, width, 1), jnp.float32))

    n_data = B * width * T
    return pl.pallas_call(
        _chain_branch_kernel,
        out_shape=out_shape,
        grid_spec=pl.GridSpec(
            grid=(nbt, ntt),
            in_specs=[_slab_spec(branch, tb, width, tT),        # x chunk i
                      y_spec,                                    # y_{i-1}
                      col_spec, col_spec,                        # folded BN scale/shift i-1
                      mat_spec, col_spec,                        # conv W_i / b_i
                      pl.BlockSpec(memory_space=pl.ANY)],        # carried out buffer
            out_specs=[_slab_spec(branch - 1, tb, width, tT),    # out: slab i-1 = sp_{i-1}
                       y_spec, stats_spec, stats_spec]),
        input_output_aliases={6: 0},                             # out buffer in-place
        compiler_params=pltpu.CompilerParams(
            dimension_semantics=("parallel", "parallel"),
            vmem_limit_bytes=vmem_limit),
        cost_estimate=pl.CostEstimate(
            flops=2 * B * width * width * T + 9 * n_data, transcendentals=0,
            bytes_accessed=4 * (4 * n_data + width * width + 4 * width)),
    )(x, y_prev, sc, sh, w, b, out_carry)


def _final_affine_call(y, sc, sh, out_carry, *, branch, width, tb, tT, vmem_limit):
    B, C, T = out_carry.shape
    nbt, ntt = B // tb, T // tT

    y_spec = pl.BlockSpec((tb, width, tT), lambda ib, it: (ib, 0, it))
    col_spec = pl.BlockSpec((width, 1), lambda ib, it: (0, 0))

    n_data = B * width * T
    return pl.pallas_call(
        _final_affine_kernel,
        out_shape=jax.ShapeDtypeStruct((B, C, T), jnp.float32),
        grid_spec=pl.GridSpec(
            grid=(nbt, ntt),
            in_specs=[y_spec, col_spec, col_spec,
                      pl.BlockSpec(memory_space=pl.ANY)],        # carried out buffer
            out_specs=_slab_spec(branch, tb, width, tT)),        # out: last branch's slab
        input_output_aliases={3: 0},
        compiler_params=pltpu.CompilerParams(
            dimension_semantics=("parallel", "parallel"),
            vmem_limit_bytes=vmem_limit),
        cost_estimate=pl.CostEstimate(
            flops=2 * n_data, transcendentals=0,
            bytes_accessed=4 * (2 * n_data + 2 * width)),
    )(y, sc, sh, out_carry)


# ---------------------------------------------------------------------------
# Forward pass
# ---------------------------------------------------------------------------
@functools.partial(jax.jit, static_argnames=("scale", "batch_tile", "time_tile"))
def res2conv1d_relu_bn(x, params, scale=4, batch_tile=None, time_tile=None):
    """x: (B, C, T) f32.  Returns (B, C, T) f32 (train-mode BatchNorm semantics)."""
    B, C, T = x.shape
    assert C % scale == 0, f"{C} % {scale} != 0"
    width = C // scale
    assert scale == 1 or width % 8 == 0, \
        "channel-slab BlockSpecs on the (B, C, T) arrays need width % 8 == 0"
    nums = scale if scale == 1 else scale - 1

    vmem_limit = _vmem_limit_bytes()
    tb, tT = _pick_tiles(B, width, T, vmem_limit, batch_tile, time_tile)
    count = float(B * T)

    def fold_bn(s_parts, sq_parts, gamma, beta):
        s = jnp.sum(s_parts, axis=0)                       # (width, 1)
        sq = jnp.sum(sq_parts, axis=0)
        mean = s / count
        var = jnp.maximum(sq / count - mean * mean, 0.0)   # biased var, clamped (one-pass)
        inv_std = jax.lax.rsqrt(var + BN_EPS)
        sc = gamma * inv_std                               # gamma / sqrt(var + eps)
        sh = beta - mean * sc                              # beta - mean * scale
        return sc, sh

    # Branch 0: conv+relu+stats (and fused pass-through slab copy into `out`).
    out, y, s_parts, sq_parts = _first_branch_call(
        x, params["conv_w"][0], params["conv_b"][0],
        scale=scale, width=width, tb=tb, tT=tT, vmem_limit=vmem_limit)
    sc, sh = fold_bn(s_parts, sq_parts, params["bn_g"][0], params["bn_b"][0])

    # Branches 1..nums-1: fused [BN affine of i-1 -> out slab] + residual + conv+relu+stats.
    for i in range(1, nums):
        out, y, s_parts, sq_parts = _chain_branch_call(
            x, y, sc, sh, params["conv_w"][i], params["conv_b"][i], out,
            branch=i, width=width, tb=tb, tT=tT, vmem_limit=vmem_limit)
        sc, sh = fold_bn(s_parts, sq_parts, params["bn_g"][i], params["bn_b"][i])

    # Last branch's BN affine -> its slab of `out`.
    out = _final_affine_call(y, sc, sh, out, branch=nums - 1, width=width,
                             tb=tb, tT=tT, vmem_limit=vmem_limit)
    return out


# ---------------------------------------------------------------------------
# Parameter init (PyTorch Conv1d / BatchNorm1d defaults, kernel_size=1)
# ---------------------------------------------------------------------------
def init_params(key, channels, scale):
    width = channels // scale
    nums = scale if scale == 1 else scale - 1
    bound = 1.0 / math.sqrt(width)           # fan_in = width * kernel_size(=1)
    conv_w, conv_b, bn_g, bn_b = [], [], [], []
    for _ in range(nums):
        key, k1, k2 = jax.random.split(key, 3)
        conv_w.append(jax.random.uniform(k1, (width, width), jnp.float32, -bound, bound))
        conv_b.append(jax.random.uniform(k2, (width, 1), jnp.float32, -bound, bound))
        bn_g.append(jnp.ones((width, 1), jnp.float32))
        bn_b.append(jnp.zeros((width, 1), jnp.float32))
    return {"conv_w": conv_w, "conv_b": conv_b, "bn_g": bn_g, "bn_b": bn_b}


# ---------------------------------------------------------------------------
# Pure-JAX reference (faithful to the PyTorch module, train-mode BN)
# ---------------------------------------------------------------------------
def _reference(x, params, scale):
    B, C, T = x.shape
    width = C // scale
    nums = scale if scale == 1 else scale - 1
    spx = [x[:, i * width:(i + 1) * width, :] for i in range(scale)]
    outs = []
    sp = None
    for i in range(nums):
        cur = spx[i] if i == 0 else sp + spx[i]
        y = jnp.einsum("oc,bct->bot", params["conv_w"][i], cur) + params["conv_b"][i]
        y = jnp.maximum(y, 0.0)
        mean = jnp.mean(y, axis=(0, 2), keepdims=True)
        var = jnp.mean((y - mean) ** 2, axis=(0, 2), keepdims=True)
        sp = (y - mean) / jnp.sqrt(var + BN_EPS) * params["bn_g"][i] + params["bn_b"][i]
        outs.append(sp)
    if scale != 1:
        outs.append(spx[scale - 1])
    return jnp.concatenate(outs, axis=1)


if __name__ == "__main__":
    key = jax.random.PRNGKey(0)
    pkey, xkey = jax.random.split(key)

    # Small but lane/sublane-friendly shapes: width = 64/4 = 16, T = 2 x 128 lanes.
    B, CHANNELS, T, SCALE = 4, 64, 256, 4
    params = init_params(pkey, CHANNELS, SCALE)
    x = jax.random.normal(xkey, (B, CHANNELS, T), jnp.float32)
    ref = _reference(x, params, SCALE)

    # Explicit tiles -> 2x2 grid, exercising batch+time tiling, partial-stat reduction
    # and the aliased in-place slab writes.
    out = res2conv1d_relu_bn(x, params, scale=SCALE, batch_tile=2, time_tile=128)
    out = jax.block_until_ready(out)
    assert out.shape == (B, CHANNELS, T)
    assert jnp.allclose(out, ref, atol=2e-3, rtol=2e-3), "mismatch vs reference (tiled)"

    # Auto tile selection path (VMEM-budget-driven, single tile here).
    out2 = jax.block_until_ready(res2conv1d_relu_bn(x, params, scale=SCALE))
    assert jnp.allclose(out2, ref, atol=2e-3, rtol=2e-3), "mismatch vs reference (auto)"

    print("KERNEL_OK")
</pallas_src>

<mosaic_0001>
module attributes {stable_mosaic.version = 11 : i64} {
  func.func @_first_branch_kernel(%arg0: i32, %arg1: i32, %arg2: memref<2x16x128xf32, #tpu.memory_space<vmem>>, %arg3: memref<2x16x128xf32, #tpu.memory_space<vmem>>, %arg4: memref<16x16xf32, #tpu.memory_space<vmem>>, %arg5: memref<16x1xf32, #tpu.memory_space<vmem>>, %arg6: memref<2x16x128xf32, #tpu.memory_space<vmem>>, %arg7: memref<2x16x128xf32, #tpu.memory_space<vmem>>, %arg8: memref<1x16x1xf32, #tpu.memory_space<vmem>>, %arg9: memref<1x16x1xf32, #tpu.memory_space<vmem>>) attributes {dimension_semantics = [#tpu.dimension_semantics<parallel>, #tpu.dimension_semantics<parallel>], iteration_bounds = array<i64: 2, 2>, scalar_prefetch = 0 : i64, scratch_operands = 0 : i64, tpu.core_type = #tpu.core_type<tc>, window_params = [{transform_indices = @transform_0, window_bounds = array<i64: 2, 16, 128>}, {transform_indices = @transform_1, window_bounds = array<i64: 2, 16, 128>}, {pipeline_mode = #tpu.pipeline_mode<synchronous>, transform_indices = @transform_2, window_bounds = array<i64: 16, 16>}, {pipeline_mode = #tpu.pipeline_mode<synchronous>, transform_indices = @transform_3, window_bounds = array<i64: 16, 1>}, {transform_indices = @transform_4, window_bounds = array<i64: 2, 16, 128>}, {transform_indices = @transform_5, window_bounds = array<i64: 2, 16, 128>}, {transform_indices = @transform_6, window_bounds = array<i64: 1, 16, 1>}, {transform_indices = @transform_7, window_bounds = array<i64: 1, 16, 1>}]} {
    %c0 = arith.constant 0 : index
    %c0_0 = arith.constant 0 : index
    %c0_1 = arith.constant 0 : index
    %0 = vector.load %arg3[%c0, %c0_0, %c0_1] : memref<2x16x128xf32, #tpu.memory_space<vmem>>, vector<2x16x128xf32>
    %c0_2 = arith.constant 0 : index
    %c0_3 = arith.constant 0 : index
    %c0_4 = arith.constant 0 : index
    %1 = vector.load %arg6[%c0_2, %c0_3, %c0_4] : memref<2x16x128xf32, #tpu.memory_space<vmem>>, vector<2x16x128xf32>
    tpu.vector_store %arg6[%c0_2, %c0_3, %c0_4], %0 {strides = array<i32>} : memref<2x16x128xf32, #tpu.memory_space<vmem>>, vector<2x16x128xf32>,
    %c0_5 = arith.constant 0 : index
    %c0_6 = arith.constant 0 : index
    %2 = vector.load %arg4[%c0_5, %c0_6] : memref<16x16xf32, #tpu.memory_space<vmem>>, vector<16x16xf32>
    %c0_7 = arith.constant 0 : index
    %c0_8 = arith.constant 0 : index
    %3 = vector.load %arg5[%c0_7, %c0_8] : memref<16x1xf32, #tpu.memory_space<vmem>>, vector<16x1xf32>
    %cst = arith.constant 0.000000e+00 : f32
    %4 = vector.broadcast %cst : f32 to vector<16x1xf32>
    %cst_9 = arith.constant 0.000000e+00 : f32
    %5 = vector.broadcast %cst_9 : f32 to vector<16x1xf32>
    %c0_i32 = arith.constant 0 : i32
    %6 = arith.index_cast %c0_i32 : i32 to index
    %c0_10 = arith.constant 0 : index
    %c0_11 = arith.constant 0 : index
    %7 = vector.load %arg2[%6, %c0_10, %c0_11] : memref<2x16x128xf32, #tpu.memory_space<vmem>>, vector<1x16x128xf32>
    %8 = vector.shape_cast %7 : vector<1x16x128xf32> to vector<16x128xf32>
    %cst_12 = arith.constant dense<0.000000e+00> : vector<16x128xf32>
    %9 = tpu.matmul %2, %8, %cst_12 {dimension_numbers = #tpu.dot_dimension_numbers<[1], [0], [0], [1], [0, 0, 1, 1], [], []>} : vector<16x16xf32>, vector<16x128xf32>, vector<16x128xf32> -> vector<16x128xf32>
    %10 = vector.broadcast %3 : vector<16x1xf32> to vector<16x128xf32>
    %11 = arith.addf %9, %10 : vector<16x128xf32>
    %cst_13 = arith.constant 0.000000e+00 : f32
    %12 = vector.broadcast %cst_13 : f32 to vector<16x128xf32>
    %13 = arith.maximumf %11, %12 : vector<16x128xf32>
    %14 = arith.index_cast %c0_i32 : i32 to index
    %c0_14 = arith.constant 0 : index
    %c0_15 = arith.constant 0 : index
    %15 = vector.load %arg7[%14, %c0_14, %c0_15] : memref<2x16x128xf32, #tpu.memory_space<vmem>>, vector<1x16x128xf32>
    %16 = vector.shape_cast %15 : vector<1x16x128xf32> to vector<16x128xf32>
    %17 = vector.shape_cast %13 : vector<16x128xf32> to vector<1x16x128xf32>
    tpu.vector_store %arg7[%14, %c0_14, %c0_15], %17 {strides = array<i32>} : memref<2x16x128xf32, #tpu.memory_space<vmem>>, vector<1x16x128xf32>,
    %cst_16 = arith.constant dense<0.000000e+00> : vector<16xf32>
    %18 = vector.multi_reduction <add>, %13, %cst_16 [1] : vector<16x128xf32> to vector<16xf32>
    %19 = vector.shape_cast %18 : vector<16xf32> to vector<16x1xf32>
    %20 = arith.addf %4, %19 : vector<16x1xf32>
    %21 = arith.mulf %13, %13 : vector<16x128xf32>
    %cst_17 = arith.constant dense<0.000000e+00> : vector<16xf32>
    %22 = vector.multi_reduction <add>, %21, %cst_17 [1] : vector<16x128xf32> to vector<16xf32>
    %23 = vector.shape_cast %22 : vector<16xf32> to vector<16x1xf32>
    %24 = arith.addf %5, %23 : vector<16x1xf32>
    %c1_i32 = arith.constant 1 : i32
    %25 = arith.index_cast %c1_i32 : i32 to index
    %c0_18 = arith.constant 0 : index
    %c0_19 = arith.constant 0 : index
    %26 = vector.load %arg2[%25, %c0_18, %c0_19] : memref<2x16x128xf32, #tpu.memory_space<vmem>>, vector<1x16x128xf32>
    %27 = vector.shape_cast %26 : vector<1x16x128xf32> to vector<16x128xf32>
    %cst_20 = arith.constant dense<0.000000e+00> : vector<16x128xf32>
    %28 = tpu.matmul %2, %27, %cst_20 {dimension_numbers = #tpu.dot_dimension_numbers<[1], [0], [0], [1], [0, 0, 1, 1], [], []>} : vector<16x16xf32>, vector<16x128xf32>, vector<16x128xf32> -> vector<16x128xf32>
    %29 = vector.broadcast %3 : vector<16x1xf32> to vector<16x128xf32>
    %30 = arith.addf %28, %29 : vector<16x128xf32>
    %cst_21 = arith.constant 0.000000e+00 : f32
    %31 = vector.broadcast %cst_21 : f32 to vector<16x128xf32>
    %32 = arith.maximumf %30, %31 : vector<16x128xf32>
    %33 = arith.index_cast %c1_i32 : i32 to index
    %c0_22 = arith.constant 0 : index
    %c0_23 = arith.constant 0 : index
    %34 = vector.load %arg7[%33, %c0_22, %c0_23] : memref<2x16x128xf32, #tpu.memory_space<vmem>>, vector<1x16x128xf32>
    %35 = vector.shape_cast %34 : vector<1x16x128xf32> to vector<16x128xf32>
    %36 = vector.shape_cast %32 : vector<16x128xf32> to vector<1x16x128xf32>
    tpu.vector_store %arg7[%33, %c0_22, %c0_23], %36 {strides = array<i32>} : memref<2x16x128xf32, #tpu.memory_space<vmem>>, vector<1x16x128xf32>,
    %cst_24 = arith.constant dense<0.000000e+00> : vector<16xf32>
    %37 = vector.multi_reduction <add>, %32, %cst_24 [1] : vector<16x128xf32> to vector<16xf32>
    %38 = vector.shape_cast %37 : vector<16xf32> to vector<16x1xf32>
    %39 = arith.addf %20, %38 : vector<16x1xf32>
    %40 = arith.mulf %32, %32 : vector<16x128xf32>
    %cst_25 = arith.constant dense<0.000000e+00> : vector<16xf32>
    %41 = vector.multi_reduction <add>, %40, %cst_25 [1] : vector<16x128xf32> to vector<16xf32>
    %42 = vector.shape_cast %41 : vector<16xf32> to vector<16x1xf32>
    %43 = arith.addf %24, %42 : vector<16x1xf32>
    %c2_i32 = arith.constant 2 : i32
    %c0_26 = arith.constant 0 : index
    %c0_27 = arith.constant 0 : index
    %c0_28 = arith.constant 0 : index
    %44 = vector.load %arg8[%c0_26, %c0_27, %c0_28] : memref<1x16x1xf32, #tpu.memory_space<vmem>>, vector<1x16x1xf32>
    %45 = vector.shape_cast %44 : vector<1x16x1xf32> to vector<16x1xf32>
    %46 = vector.shape_cast %39 : vector<16x1xf32> to vector<1x16x1xf32>
    tpu.vector_store %arg8[%c0_26, %c0_27, %c0_28], %46 {strides = array<i32>} : memref<1x16x1xf32, #tpu.memory_space<vmem>>, vector<1x16x1xf32>,
    %c0_29 = arith.constant 0 : index
    %c0_30 = arith.constant 0 : index
    %c0_31 = arith.constant 0 : index
    %47 = vector.load %arg9[%c0_29, %c0_30, %c0_31] : memref<1x16x1xf32, #tpu.memory_space<vmem>>, vector<1x16x1xf32>
    %48 = vector.shape_cast %47 : vector<1x16x1xf32> to vector<16x1xf32>
    %49 = vector.shape_cast %43 : vector<16x1xf32> to vector<1x16x1xf32>
    tpu.vector_store %arg9[%c0_29, %c0_30, %c0_31], %49 {strides = array<i32>} : memref<1x16x1xf32, #tpu.memory_space<vmem>>, vector<1x16x1xf32>,
    return
  }
  func.func @transform_0(%arg0: i32, %arg1: i32) -> (i32, i32, i32) {
    %c0_i32 = arith.constant 0 : i32
    %c0_i32_0 = arith.constant 0 : i32
    return %arg0, %c0_i32, %arg1 : i32, i32, i32
  }
  func.func @transform_1(%arg0: i32, %arg1: i32) -> (i32, i32, i32) {
    %c3_i32 = arith.constant 3 : i32
    %c0_i32 = arith.constant 0 : i32
    return %arg0, %c3_i32, %arg1 : i32, i32, i32
  }
  func.func @transform_2(%arg0: i32, %arg1: i32) -> (i32, i32) {
    %c0_i32 = arith.constant 0 : i32
    %c0_i32_0 = arith.constant 0 : i32
    %c0_i32_1 = arith.constant 0 : i32
    return %c0_i32, %c0_i32_0 : i32, i32
  }
  func.func @transform_3(%arg0: i32, %arg1: i32) -> (i32, i32) {
    %c0_i32 = arith.constant 0 : i32
    %c0_i32_0 = arith.constant 0 : i32
    %c0_i32_1 = arith.constant 0 : i32
    return %c0_i32, %c0_i32_0 : i32, i32
  }
  func.func @transform_4(%arg0: i32, %arg1: i32) -> (i32, i32, i32) {
    %c3_i32 = arith.constant 3 : i32
    %c0_i32 = arith.constant 0 : i32
    return %arg0, %c3_i32, %arg1 : i32, i32, i32
  }
  func.func @transform_5(%arg0: i32, %arg1: i32) -> (i32, i32, i32) {
    %c0_i32 = arith.constant 0 : i32
    %c0_i32_0 = arith.constant 0 : i32
    return %arg0, %c0_i32, %arg1 : i32, i32, i32
  }
  func.func @transform_6(%arg0: i32, %arg1: i32) -> (i32, i32, i32) {
    %c2_i32 = arith.constant 2 : i32
    %0 = arith.muli %arg0, %c2_i32 : i32
    %1 = arith.addi %0, %arg1 : i32
    %c0_i32 = arith.constant 0 : i32
    %c0_i32_0 = arith.constant 0 : i32
    %c0_i32_1 = arith.constant 0 : i32
    return %1, %c0_i32, %c0_i32_0 : i32, i32, i32
  }
  func.func @transform_7(%arg0: i32, %arg1: i32) -> (i32, i32, i32) {
    %c2_i32 = arith.constant 2 : i32
    %0 = arith.muli %arg0, %c2_i32 : i32
    %1 = arith.addi %0, %arg1 : i32
    %c0_i32 = arith.constant 0 : i32
    %c0_i32_0 = arith.constant 0 : i32
    %c0_i32_1 = arith.constant 0 : i32
    return %1, %c0_i32, %c0_i32_0 : i32, i32, i32
  }
}

module attributes {stable_mosaic.version = 11 : i64} {
  func.func @_chain_branch_kernel(%arg0: i32, %arg1: i32, %arg2: memref<2x16x128xf32, #tpu.memory_space<vmem>>, %arg3: memref<2x16x128xf32, #tpu.memory_space<vmem>>, %arg4: memref<16x1xf32, #tpu.memory_space<vmem>>, %arg5: memref<16x1xf32, #tpu.memory_space<vmem>>, %arg6: memref<16x16xf32, #tpu.memory_space<vmem>>, %arg7: memref<16x1xf32, #tpu.memory_space<vmem>>, %arg8: memref<4x64x256xf32, #tpu.memory_space<any>>, %arg9: memref<2x16x128xf32, #tpu.memory_space<vmem>>, %arg10: memref<2x16x128xf32, #tpu.memory_space<vmem>>, %arg11: memref<1x16x1xf32, #tpu.memory_space<vmem>>, %arg12: memref<1x16x1xf32, #tpu.memory_space<vmem>>) attributes {dimension_semantics = [#tpu.dimension_semantics<parallel>, #tpu.dimension_semantics<parallel>], iteration_bounds = array<i64: 2, 2>, scalar_prefetch = 0 : i64, scratch_operands = 0 : i64, tpu.core_type = #tpu.core_type<tc>, window_params = [{transform_indices = @transform_0, window_bounds = array<i64: 2, 16, 128>}, {transform_indices = @transform_1, window_bounds = array<i64: 2, 16, 128>}, {pipeline_mode = #tpu.pipeline_mode<synchronous>, transform_indices = @transform_2, window_bounds = array<i64: 16, 1>}, {pipeline_mode = #tpu.pipeline_mode<synchronous>, transform_indices = @transform_3, window_bounds = array<i64: 16, 1>}, {pipeline_mode = #tpu.pipeline_mode<synchronous>, transform_indices = @transform_4, window_bounds = array<i64: 16, 16>}, {pipeline_mode = #tpu.pipeline_mode<synchronous>, transform_indices = @transform_5, window_bounds = array<i64: 16, 1>}, {}, {transform_indices = @transform_7, window_bounds = array<i64: 2, 16, 128>}, {transform_indices = @transform_8, window_bounds = array<i64: 2, 16, 128>}, {transform_indices = @transform_9, window_bounds = array<i64: 1, 16, 1>}, {transform_indices = @transform_10, window_bounds = array<i64: 1, 16, 1>}]} {
    %c0 = arith.constant 0 : index
    %c0_0 = arith.constant 0 : index
    %0 = vector.load %arg4[%c0, %c0_0] : memref<16x1xf32, #tpu.memory_space<vmem>>, vector<16x1xf32>
    %c0_1 = arith.constant 0 : index
    %c0_2 = arith.constant 0 : index
    %1 = vector.load %arg5[%c0_1, %c0_2] : memref<16x1xf32, #tpu.memory_space<vmem>>, vector<16x1xf32>
    %c0_3 = arith.constant 0 : index
    %c0_4 = arith.constant 0 : index
    %2 = vector.load %arg6[%c0_3, %c0_4] : memref<16x16xf32, #tpu.memory_space<vmem>>, vector<16x16xf32>
    %c0_5 = arith.constant 0 : index
    %c0_6 = arith.constant 0 : index
    %3 = vector.load %arg7[%c0_5, %c0_6] : memref<16x1xf32, #tpu.memory_space<vmem>>, vector<16x1xf32>
    %cst = arith.constant 0.000000e+00 : f32
    %4 = vector.broadcast %cst : f32 to vector<16x1xf32>
    %cst_7 = arith.constant 0.000000e+00 : f32
    %5 = vector.broadcast %cst_7 : f32 to vector<16x1xf32>
    %c0_i32 = arith.constant 0 : i32
    %6 = arith.index_cast %c0_i32 : i32 to index
    %c0_8 = arith.constant 0 : index
    %c0_9 = arith.constant 0 : index
    %7 = vector.load %arg3[%6, %c0_8, %c0_9] : memref<2x16x128xf32, #tpu.memory_space<vmem>>, vector<1x16x128xf32>
    %8 = vector.shape_cast %7 : vector<1x16x128xf32> to vector<16x128xf32>
    %9 = vector.broadcast %0 : vector<16x1xf32> to vector<16x128xf32>
    %10 = arith.mulf %8, %9 : vector<16x128xf32>
    %11 = vector.broadcast %1 : vector<16x1xf32> to vector<16x128xf32>
    %12 = arith.addf %10, %11 : vector<16x128xf32>
    %13 = arith.index_cast %c0_i32 : i32 to index
    %c0_10 = arith.constant 0 : index
    %c0_11 = arith.constant 0 : index
    %14 = vector.load %arg9[%13, %c0_10, %c0_11] : memref<2x16x128xf32, #tpu.memory_space<vmem>>, vector<1x16x128xf32>
    %15 = vector.shape_cast %14 : vector<1x16x128xf32> to vector<16x128xf32>
    %16 = vector.shape_cast %12 : vector<16x128xf32> to vector<1x16x128xf32>
    tpu.vector_store %arg9[%13, %c0_10, %c0_11], %16 {strides = array<i32>} : memref<2x16x128xf32, #tpu.memory_space<vmem>>, vector<1x16x128xf32>,
    %17 = arith.index_cast %c0_i32 : i32 to index
    %c0_12 = arith.constant 0 : index
    %c0_13 = arith.constant 0 : index
    %18 = vector.load %arg2[%17, %c0_12, %c0_13] : memref<2x16x128xf32, #tpu.memory_space<vmem>>, vector<1x16x128xf32>
    %19 = vector.shape_cast %18 : vector<1x16x128xf32> to vector<16x128xf32>
    %20 = arith.addf %12, %19 : vector<16x128xf32>
    %cst_14 = arith.constant dense<0.000000e+00> : vector<16x128xf32>
    %21 = tpu.matmul %2, %20, %cst_14 {dimension_numbers = #tpu.dot_dimension_numbers<[1], [0], [0], [1], [0, 0, 1, 1], [], []>} : vector<16x16xf32>, vector<16x128xf32>, vector<16x128xf32> -> vector<16x128xf32>
    %22 = vector.broadcast %3 : vector<16x1xf32> to vector<16x128xf32>
    %23 = arith.addf %21, %22 : vector<16x128xf32>
    %cst_15 = arith.constant 0.000000e+00 : f32
    %24 = vector.broadcast %cst_15 : f32 to vector<16x128xf32>
    %25 = arith.maximumf %23, %24 : vector<16x128xf32>
    %26 = arith.index_cast %c0_i32 : i32 to index
    %c0_16 = arith.constant 0 : index
    %c0_17 = arith.constant 0 : index
    %27 = vector.load %arg10[%26, %c0_16, %c0_17] : memref<2x16x128xf32, #tpu.memory_space<vmem>>, vector<1x16x128xf32>
    %28 = vector.shape_cast %27 : vector<1x16x128xf32> to vector<16x128xf32>
    %29 = vector.shape_cast %25 : vector<16x128xf32> to vector<1x16x128xf32>
    tpu.vector_store %arg10[%26, %c0_16, %c0_17], %29 {strides = array<i32>} : memref<2x16x128xf32, #tpu.memory_space<vmem>>, vector<1x16x128xf32>,
    %cst_18 = arith.constant dense<0.000000e+00> : vector<16xf32>
    %30 = vector.multi_reduction <add>, %25, %cst_18 [1] : vector<16x128xf32> to vector<16xf32>
    %31 = vector.shape_cast %30 : vector<16xf32> to vector<16x1xf32>
    %32 = arith.addf %4, %31 : vector<16x1xf32>
    %33 = arith.mulf %25, %25 : vector<16x128xf32>
    %cst_19 = arith.constant dense<0.000000e+00> : vector<16xf32>
    %34 = vector.multi_reduction <add>, %33, %cst_19 [1] : vector<16x128xf32> to vector<16xf32>
    %35 = vector.shape_cast %34 : vector<16xf32> to vector<16x1xf32>
    %36 = arith.addf %5, %35 : vector<16x1xf32>
    %c1_i32 = arith.constant 1 : i32
    %37 = arith.index_cast %c1_i32 : i32 to index
    %c0_20 = arith.constant 0 : index
    %c0_21 = arith.constant 0 : index
    %38 = vector.load %arg3[%37, %c0_20, %c0_21] : memref<2x16x128xf32, #tpu.memory_space<vmem>>, vector<1x16x128xf32>
    %39 = vector.shape_cast %38 : vector<1x16x128xf32> to vector<16x128xf32>
    %40 = vector.broadcast %0 : vector<16x1xf32> to vector<16x128xf32>
    %41 = arith.mulf %39, %40 : vector<16x128xf32>
    %42 = vector.broadcast %1 : vector<16x1xf32> to vector<16x128xf32>
    %43 = arith.addf %41, %42 : vector<16x128xf32>
    %44 = arith.index_cast %c1_i32 : i32 to index
    %c0_22 = arith.constant 0 : index
    %c0_23 = arith.constant 0 : index
    %45 = vector.load %arg9[%44, %c0_22, %c0_23] : memref<2x16x128xf32, #tpu.memory_space<vmem>>, vector<1x16x128xf32>
    %46 = vector.shape_cast %45 : vector<1x16x128xf32> to vector<16x128xf32>
    %47 = vector.shape_cast %43 : vector<16x128xf32> to vector<1x16x128xf32>
    tpu.vector_store %arg9[%44, %c0_22, %c0_23], %47 {strides = array<i32>} : memref<2x16x128xf32, #tpu.memory_space<vmem>>, vector<1x16x128xf32>,
    %48 = arith.index_cast %c1_i32 : i32 to index
    %c0_24 = arith.constant 0 : index
    %c0_25 = arith.constant 0 : index
    %49 = vector.load %arg2[%48, %c0_24, %c0_25] : memref<2x16x128xf32, #tpu.memory_space<vmem>>, vector<1x16x128xf32>
    %50 = vector.shape_cast %49 : vector<1x16x128xf32> to vector<16x128xf32>
    %51 = arith.addf %43, %50 : vector<16x128xf32>
    %cst_26 = arith.constant dense<0.000000e+00> : vector<16x128xf32>
    %52 = tpu.matmul %2, %51, %cst_26 {dimension_numbers = #tpu.dot_dimension_numbers<[1], [0], [0], [1], [0, 0, 1, 1], [], []>} : vector<16x16xf32>, vector<16x128xf32>, vector<16x128xf32> -> vector<16x128xf32>
    %53 = vector.broadcast %3 : vector<16x1xf32> to vector<16x128xf32>
    %54 = arith.addf %52, %53 : vector<16x128xf32>
    %cst_27 = arith.constant 0.000000e+00 : f32
    %55 = vector.broadcast %cst_27 : f32 to vector<16x128xf32>
    %56 = arith.maximumf %54, %55 : vector<16x128xf32>
    %57 = arith.index_cast %c1_i32 : i32 to index
    %c0_28 = arith.constant 0 : index
    %c0_29 = arith.constant 0 : index
    %58 = vector.load %arg10[%57, %c0_28, %c0_29] : memref<2x16x128xf32, #tpu.memory_space<vmem>>, vector<1x16x128xf32>
    %59 = vector.shape_cast %58 : vector<1x16x128xf32> to vector<16x128xf32>
    %60 = vector.shape_cast %56 : vector<16x128xf32> to vector<1x16x128xf32>
    tpu.vector_store %arg10[%57, %c0_28, %c0_29], %60 {strides = array<i32>} : memref<2x16x128xf32, #tpu.memory_space<vmem>>, vector<1x16x128xf32>,
    %cst_30 = arith.constant dense<0.000000e+00> : vector<16xf32>
    %61 = vector.multi_reduction <add>, %56, %cst_30 [1] : vector<16x128xf32> to vector<16xf32>
    %62 = vector.shape_cast %61 : vector<16xf32> to vector<16x1xf32>
    %63 = arith.addf %32, %62 : vector<16x1xf32>
    %64 = arith.mulf %56, %56 : vector<16x128xf32>
    %cst_31 = arith.constant dense<0.000000e+00> : vector<16xf32>
    %65 = vector.multi_reduction <add>, %64, %cst_31 [1] : vector<16x128xf32> to vector<16xf32>
    %66 = vector.shape_cast %65 : vector<16xf32> to vector<16x1xf32>
    %67 = arith.addf %36, %66 : vector<16x1xf32>
    %c2_i32 = arith.constant 2 : i32
    %c0_32 = arith.constant 0 : index
    %c0_33 = arith.constant 0 : index
    %c0_34 = arith.constant 0 : index
    %68 = vector.load %arg11[%c0_32, %c0_33, %c0_34] : memref<1x16x1xf32, #tpu.memory_space<vmem>>, vector<1x16x1xf32>
    %69 = vector.shape_cast %68 : vector<1x16x1xf32> to vector<16x1xf32>
    %70 = vector.shape_cast %63 : vector<16x1xf32> to vector<1x16x1xf32>
    tpu.vector_store %arg11[%c0_32, %c0_33, %c0_34], %70 {strides = array<i32>} : memref<1x16x1xf32, #tpu.memory_space<vmem>>, vector<1x16x1xf32>,
    %c0_35 = arith.constant 0 : index
    %c0_36 = arith.constant 0 : index
    %c0_37 = arith.constant 0 : index
    %71 = vector.load %arg12[%c0_35, %c0_36, %c0_37] : memref<1x16x1xf32, #tpu.memory_space<vmem>>, vector<1x16x1xf32>
    %72 = vector.shape_cast %71 : vector<1x16x1xf32> to vector<16x1xf32>
    %73 = vector.shape_cast %67 : vector<16x1xf32> to vector<1x16x1xf32>
    tpu.vector_store %arg12[%c0_35, %c0_36, %c0_37], %73 {strides = array<i32>} : memref<1x16x1xf32, #tpu.memory_space<vmem>>, vector<1x16x1xf32>,
    return
  }
  func.func @transform_0(%arg0: i32, %arg1: i32) -> (i32, i32, i32) {
    %c2_i32 = arith.constant 2 : i32
    %c0_i32 = arith.constant 0 : i32
    return %arg0, %c2_i32, %arg1 : i32, i32, i32
  }
  func.func @transform_1(%arg0: i32, %arg1: i32) -> (i32, i32, i32) {
    %c0_i32 = arith.constant 0 : i32
    %c0_i32_0 = arith.constant 0 : i32
    return %arg0, %c0_i32, %arg1 : i32, i32, i32
  }
  func.func @transform_2(%arg0: i32, %arg1: i32) -> (i32, i32) {
    %c0_i32 = arith.constant 0 : i32
    %c0_i32_0 = arith.constant 0 : i32
    %c0_i32_1 = arith.constant 0 : i32
    return %c0_i32, %c0_i32_0 : i32, i32
  }
  func.func @transform_3(%arg0: i32, %arg1: i32) -> (i32, i32) {
    %c0_i32 = arith.constant 0 : i32
    %c0_i32_0 = arith.constant 0 : i32
    %c0_i32_1 = arith.constant 0 : i32
    return %c0_i32, %c0_i32_0 : i32, i32
  }
  func.func @transform_4(%arg0: i32, %arg1: i32) -> (i32, i32) {
    %c0_i32 = arith.constant 0 : i32
    %c0_i32_0 = arith.constant 0 : i32
    %c0_i32_1 = arith.constant 0 : i32
    return %c0_i32, %c0_i32_0 : i32, i32
  }
  func.func @transform_5(%arg0: i32, %arg1: i32) -> (i32, i32) {
    %c0_i32 = arith.constant 0 : i32
    %c0_i32_0 = arith.constant 0 : i32
    %c0_i32_1 = arith.constant 0 : i32
    return %c0_i32, %c0_i32_0 : i32, i32
  }
  func.func @transform_7(%arg0: i32, %arg1: i32) -> (i32, i32, i32) {
    %c1_i32 = arith.constant 1 : i32
    %c0_i32 = arith.constant 0 : i32
    return %arg0, %c1_i32, %arg1 : i32, i32, i32
  }
  func.func @transform_8(%arg0: i32, %arg1: i32) -> (i32, i32, i32) {
    %c0_i32 = arith.constant 0 : i32
    %c0_i32_0 = arith.constant 0 : i32
    return %arg0, %c0_i32, %arg1 : i32, i32, i32
  }
  func.func @transform_9(%arg0: i32, %arg1: i32) -> (i32, i32, i32) {
    %c2_i32 = arith.constant 2 : i32
    %0 = arith.muli %arg0, %c2_i32 : i32
    %1 = arith.addi %0, %arg1 : i32
    %c0_i32 = arith.constant 0 : i32
    %c0_i32_0 = arith.constant 0 : i32
    %c0_i32_1 = arith.constant 0 : i32
    return %1, %c0_i32, %c0_i32_0 : i32, i32, i32
  }
  func.func @transform_10(%arg0: i32, %arg1: i32) -> (i32, i32, i32) {
    %c2_i32 = arith.constant 2 : i32
    %0 = arith.muli %arg0, %c2_i32 : i32
    %1 = arith.addi %0, %arg1 : i32
    %c0_i32 = arith.constant 0 : i32
    %c0_i32_0 = arith.constant 0 : i32
    %c0_i32_1 = arith.constant 0 : i32
    return %1, %c0_i32, %c0_i32_0 : i32, i32, i32
  }
}

module attributes {stable_mosaic.version = 11 : i64} {
  func.func @_final_affine_kernel(%arg0: i32, %arg1: i32, %arg2: memref<2x16x128xf32, #tpu.memory_space<vmem>>, %arg3: memref<16x1xf32, #tpu.memory_space<vmem>>, %arg4: memref<16x1xf32, #tpu.memory_space<vmem>>, %arg5: memref<4x64x256xf32, #tpu.memory_space<any>>, %arg6: memref<2x16x128xf32, #tpu.memory_space<vmem>>) attributes {dimension_semantics = [#tpu.dimension_semantics<parallel>, #tpu.dimension_semantics<parallel>], iteration_bounds = array<i64: 2, 2>, scalar_prefetch = 0 : i64, scratch_operands = 0 : i64, tpu.core_type = #tpu.core_type<tc>, window_params = [{transform_indices = @transform_0, window_bounds = array<i64: 2, 16, 128>}, {pipeline_mode = #tpu.pipeline_mode<synchronous>, transform_indices = @transform_1, window_bounds = array<i64: 16, 1>}, {pipeline_mode = #tpu.pipeline_mode<synchronous>, transform_indices = @transform_2, window_bounds = array<i64: 16, 1>}, {}, {transform_indices = @transform_4, window_bounds = array<i64: 2, 16, 128>}]} {
    %c0 = arith.constant 0 : index
    %c0_0 = arith.constant 0 : index
    %c0_1 = arith.constant 0 : index
    %0 = vector.load %arg2[%c0, %c0_0, %c0_1] : memref<2x16x128xf32, #tpu.memory_space<vmem>>, vector<2x16x128xf32>
    %c0_2 = arith.constant 0 : index
    %c0_3 = arith.constant 0 : index
    %1 = vector.load %arg3[%c0_2, %c0_3] : memref<16x1xf32, #tpu.memory_space<vmem>>, vector<16x1xf32>
    %2 = vector.shape_cast %1 : vector<16x1xf32> to vector<1x16x1xf32>
    %3 = vector.broadcast %2 : vector<1x16x1xf32> to vector<2x16x128xf32>
    %4 = arith.mulf %0, %3 : vector<2x16x128xf32>
    %c0_4 = arith.constant 0 : index
    %c0_5 = arith.constant 0 : index
    %5 = vector.load %arg4[%c0_4, %c0_5] : memref<16x1xf32, #tpu.memory_space<vmem>>, vector<16x1xf32>
    %6 = vector.shape_cast %5 : vector<16x1xf32> to vector<1x16x1xf32>
    %7 = vector.broadcast %6 : vector<1x16x1xf32> to vector<2x16x128xf32>
    %8 = arith.addf %4, %7 : vector<2x16x128xf32>
    %c0_6 = arith.constant 0 : index
    %c0_7 = arith.constant 0 : index
    %c0_8 = arith.constant 0 : index
    %9 = vector.load %arg6[%c0_6, %c0_7, %c0_8] : memref<2x16x128xf32, #tpu.memory_space<vmem>>, vector<2x16x128xf32>
    tpu.vector_store %arg6[%c0_6, %c0_7, %c0_8], %8 {strides = array<i32>} : memref<2x16x128xf32, #tpu.memory_space<vmem>>, vector<2x16x128xf32>,
    return
  }
  func.func @transform_0(%arg0: i32, %arg1: i32) -> (i32, i32, i32) {
    %c0_i32 = arith.constant 0 : i32
    %c0_i32_0 = arith.constant 0 : i32
    return %arg0, %c0_i32, %arg1 : i32, i32, i32
  }
  func.func @transform_1(%arg0: i32, %arg1: i32) -> (i32, i32) {
    %c0_i32 = arith.constant 0 : i32
    %c0_i32_0 = arith.constant 0 : i32
    %c0_i32_1 = arith.constant 0 : i32
    return %c0_i32, %c0_i32_0 : i32, i32
  }
  func.func @transform_2(%arg0: i32, %arg1: i32) -> (i32, i32) {
    %c0_i32 = arith.constant 0 : i32
    %c0_i32_0 = arith.constant 0 : i32
    %c0_i32_1 = arith.constant 0 : i32
    return %c0_i32, %c0_i32_0 : i32, i32
  }
  func.func @transform_4(%arg0: i32, %arg1: i32) -> (i32, i32, i32) {
    %c2_i32 = arith.constant 2 : i32
    %c0_i32 = arith.constant 0 : i32
    return %arg0, %c2_i32, %arg1 : i32, i32, i32
  }
}

module attributes {stable_mosaic.version = 11 : i64} {
  func.func @_chain_branch_kernel(%arg0: i32, %arg1: i32, %arg2: memref<2x16x128xf32, #tpu.memory_space<vmem>>, %arg3: memref<2x16x128xf32, #tpu.memory_space<vmem>>, %arg4: memref<16x1xf32, #tpu.memory_space<vmem>>, %arg5: memref<16x1xf32, #tpu.memory_space<vmem>>, %arg6: memref<16x16xf32, #tpu.memory_space<vmem>>, %arg7: memref<16x1xf32, #tpu.memory_space<vmem>>, %arg8: memref<4x64x256xf32, #tpu.memory_space<any>>, %arg9: memref<2x16x128xf32, #tpu.memory_space<vmem>>, %arg10: memref<2x16x128xf32, #tpu.memory_space<vmem>>, %arg11: memref<1x16x1xf32, #tpu.memory_space<vmem>>, %arg12: memref<1x16x1xf32, #tpu.memory_space<vmem>>) attributes {dimension_semantics = [#tpu.dimension_semantics<parallel>, #tpu.dimension_semantics<parallel>], iteration_bounds = array<i64: 2, 2>, scalar_prefetch = 0 : i64, scratch_operands = 0 : i64, tpu.core_type = #tpu.core_type<tc>, window_params = [{transform_indices = @transform_0, window_bounds = array<i64: 2, 16, 128>}, {transform_indices = @transform_1, window_bounds = array<i64: 2, 16, 128>}, {pipeline_mode = #tpu.pipeline_mode<synchronous>, transform_indices = @transform_2, window_bounds = array<i64: 16, 1>}, {pipeline_mode = #tpu.pipeline_mode<synchronous>, transform_indices = @transform_3, window_bounds = array<i64: 16, 1>}, {pipeline_mode = #tpu.pipeline_mode<synchronous>, transform_indices = @transform_4, window_bounds = array<i64: 16, 16>}, {pipeline_mode = #tpu.pipeline_mode<synchronous>, transform_indices = @transform_5, window_bounds = array<i64: 16, 1>}, {}, {transform_indices = @transform_7, window_bounds = array<i64: 2, 16, 128>}, {transform_indices = @transform_8, window_bounds = array<i64: 2, 16, 128>}, {transform_indices = @transform_9, window_bounds = array<i64: 1, 16, 1>}, {transform_indices = @transform_10, window_bounds = array<i64: 1, 16, 1>}]} {
    %c0 = arith.constant 0 : index
    %c0_0 = arith.constant 0 : index
    %0 = vector.load %arg4[%c0, %c0_0] : memref<16x1xf32, #tpu.memory_space<vmem>>, vector<16x1xf32>
    %c0_1 = arith.constant 0 : index
    %c0_2 = arith.constant 0 : index
    %1 = vector.load %arg5[%c0_1, %c0_2] : memref<16x1xf32, #tpu.memory_space<vmem>>, vector<16x1xf32>
    %c0_3 = arith.constant 0 : index
    %c0_4 = arith.constant 0 : index
    %2 = vector.load %arg6[%c0_3, %c0_4] : memref<16x16xf32, #tpu.memory_space<vmem>>, vector<16x16xf32>
    %c0_5 = arith.constant 0 : index
    %c0_6 = arith.constant 0 : index
    %3 = vector.load %arg7[%c0_5, %c0_6] : memref<16x1xf32, #tpu.memory_space<vmem>>, vector<16x1xf32>
    %cst = arith.constant 0.000000e+00 : f32
    %4 = vector.broadcast %cst : f32 to vector<16x1xf32>
    %cst_7 = arith.constant 0.000000e+00 : f32
    %5 = vector.broadcast %cst_7 : f32 to vector<16x1xf32>
    %c0_i32 = arith.constant 0 : i32
    %6 = arith.index_cast %c0_i32 : i32 to index
    %c0_8 = arith.constant 0 : index
    %c0_9 = arith.constant 0 : index
    %7 = vector.load %arg3[%6, %c0_8, %c0_9] : memref<2x16x128xf32, #tpu.memory_space<vmem>>, vector<1x16x128xf32>
    %8 = vector.shape_cast %7 : vector<1x16x128xf32> to vector<16x128xf32>
    %9 = vector.broadcast %0 : vector<16x1xf32> to vector<16x128xf32>
    %10 = arith.mulf %8, %9 : vector<16x128xf32>
    %11 = vector.broadcast %1 : vector<16x1xf32> to vector<16x128xf32>
    %12 = arith.addf %10, %11 : vector<16x128xf32>
    %13 = arith.index_cast %c0_i32 : i32 to index
    %c0_10 = arith.constant 0 : index
    %c0_11 = arith.constant 0 : index
    %14 = vector.load %arg9[%13, %c0_10, %c0_11] : memref<2x16x128xf32, #tpu.memory_space<vmem>>, vector<1x16x128xf32>
    %15 = vector.shape_cast %14 : vector<1x16x128xf32> to vector<16x128xf32>
    %16 = vector.shape_cast %12 : vector<16x128xf32> to vector<1x16x128xf32>
    tpu.vector_store %arg9[%13, %c0_10, %c0_11], %16 {strides = array<i32>} : memref<2x16x128xf32, #tpu.memory_space<vmem>>, vector<1x16x128xf32>,
    %17 = arith.index_cast %c0_i32 : i32 to index
    %c0_12 = arith.constant 0 : index
    %c0_13 = arith.constant 0 : index
    %18 = vector.load %arg2[%17, %c0_12, %c0_13] : memref<2x16x128xf32, #tpu.memory_space<vmem>>, vector<1x16x128xf32>
    %19 = vector.shape_cast %18 : vector<1x16x128xf32> to vector<16x128xf32>
    %20 = arith.addf %12, %19 : vector<16x128xf32>
    %cst_14 = arith.constant dense<0.000000e+00> : vector<16x128xf32>
    %21 = tpu.matmul %2, %20, %cst_14 {dimension_numbers = #tpu.dot_dimension_numbers<[1], [0], [0], [1], [0, 0, 1, 1], [], []>} : vector<16x16xf32>, vector<16x128xf32>, vector<16x128xf32> -> vector<16x128xf32>
    %22 = vector.broadcast %3 : vector<16x1xf32> to vector<16x128xf32>
    %23 = arith.addf %21, %22 : vector<16x128xf32>
    %cst_15 = arith.constant 0.000000e+00 : f32
    %24 = vector.broadcast %cst_15 : f32 to vector<16x128xf32>
    %25 = arith.maximumf %23, %24 : vector<16x128xf32>
    %26 = arith.index_cast %c0_i32 : i32 to index
    %c0_16 = arith.constant 0 : index
    %c0_17 = arith.constant 0 : index
    %27 = vector.load %arg10[%26, %c0_16, %c0_17] : memref<2x16x128xf32, #tpu.memory_space<vmem>>, vector<1x16x128xf32>
    %28 = vector.shape_cast %27 : vector<1x16x128xf32> to vector<16x128xf32>
    %29 = vector.shape_cast %25 : vector<16x128xf32> to vector<1x16x128xf32>
    tpu.vector_store %arg10[%26, %c0_16, %c0_17], %29 {strides = array<i32>} : memref<2x16x128xf32, #tpu.memory_space<vmem>>, vector<1x16x128xf32>,
    %cst_18 = arith.constant dense<0.000000e+00> : vector<16xf32>
    %30 = vector.multi_reduction <add>, %25, %cst_18 [1] : vector<16x128xf32> to vector<16xf32>
    %31 = vector.shape_cast %30 : vector<16xf32> to vector<16x1xf32>
    %32 = arith.addf %4, %31 : vector<16x1xf32>
    %33 = arith.mulf %25, %25 : vector<16x128xf32>
    %cst_19 = arith.constant dense<0.000000e+00> : vector<16xf32>
    %34 = vector.multi_reduction <add>, %33, %cst_19 [1] : vector<16x128xf32> to vector<16xf32>
    %35 = vector.shape_cast %34 : vector<16xf32> to vector<16x1xf32>
    %36 = arith.addf %5, %35 : vector<16x1xf32>
    %c1_i32 = arith.constant 1 : i32
    %37 = arith.index_cast %c1_i32 : i32 to index
    %c0_20 = arith.constant 0 : index
    %c0_21 = arith.constant 0 : index
    %38 = vector.load %arg3[%37, %c0_20, %c0_21] : memref<2x16x128xf32, #tpu.memory_space<vmem>>, vector<1x16x128xf32>
    %39 = vector.shape_cast %38 : vector<1x16x128xf32> to vector<16x128xf32>
    %40 = vector.broadcast %0 : vector<16x1xf32> to vector<16x128xf32>
    %41 = arith.mulf %39, %40 : vector<16x128xf32>
    %42 = vector.broadcast %1 : vector<16x1xf32> to vector<16x128xf32>
    %43 = arith.addf %41, %42 : vector<16x128xf32>
    %44 = arith.index_cast %c1_i32 : i32 to index
    %c0_22 = arith.constant 0 : index
    %c0_23 = arith.constant 0 : index
    %45 = vector.load %arg9[%44, %c0_22, %c0_23] : memref<2x16x128xf32, #tpu.memory_space<vmem>>, vector<1x16x128xf32>
    %46 = vector.shape_cast %45 : vector<1x16x128xf32> to vector<16x128xf32>
    %47 = vector.shape_cast %43 : vector<16x128xf32> to vector<1x16x128xf32>
    tpu.vector_store %arg9[%44, %c0_22, %c0_23], %47 {strides = array<i32>} : memref<2x16x128xf32, #tpu.memory_space<vmem>>, vector<1x16x128xf32>,
    %48 = arith.index_cast %c1_i32 : i32 to index
    %c0_24 = arith.constant 0 : index
    %c0_25 = arith.constant 0 : index
    %49 = vector.load %arg2[%48, %c0_24, %c0_25] : memref<2x16x128xf32, #tpu.memory_space<vmem>>, vector<1x16x128xf32>
    %50 = vector.shape_cast %49 : vector<1x16x128xf32> to vector<16x128xf32>
    %51 = arith.addf %43, %50 : vector<16x128xf32>
    %cst_26 = arith.constant dense<0.000000e+00> : vector<16x128xf32>
    %52 = tpu.matmul %2, %51, %cst_26 {dimension_numbers = #tpu.dot_dimension_numbers<[1], [0], [0], [1], [0, 0, 1, 1], [], []>} : vector<16x16xf32>, vector<16x128xf32>, vector<16x128xf32> -> vector<16x128xf32>
    %53 = vector.broadcast %3 : vector<16x1xf32> to vector<16x128xf32>
    %54 = arith.addf %52, %53 : vector<16x128xf32>
    %cst_27 = arith.constant 0.000000e+00 : f32
    %55 = vector.broadcast %cst_27 : f32 to vector<16x128xf32>
    %56 = arith.maximumf %54, %55 : vector<16x128xf32>
    %57 = arith.index_cast %c1_i32 : i32 to index
    %c0_28 = arith.constant 0 : index
    %c0_29 = arith.constant 0 : index
    %58 = vector.load %arg10[%57, %c0_28, %c0_29] : memref<2x16x128xf32, #tpu.memory_space<vmem>>, vector<1x16x128xf32>
    %59 = vector.shape_cast %58 : vector<1x16x128xf32> to vector<16x128xf32>
    %60 = vector.shape_cast %56 : vector<16x128xf32> to vector<1x16x128xf32>
    tpu.vector_store %arg10[%57, %c0_28, %c0_29], %60 {strides = array<i32>} : memref<2x16x128xf32, #tpu.memory_space<vmem>>, vector<1x16x128xf32>,
    %cst_30 = arith.constant dense<0.000000e+00> : vector<16xf32>
    %61 = vector.multi_reduction <add>, %56, %cst_30 [1] : vector<16x128xf32> to vector<16xf32>
    %62 = vector.shape_cast %61 : vector<16xf32> to vector<16x1xf32>
    %63 = arith.addf %32, %62 : vector<16x1xf32>
    %64 = arith.mulf %56, %56 : vector<16x128xf32>
    %cst_31 = arith.constant dense<0.000000e+00> : vector<16xf32>
    %65 = vector.multi_reduction <add>, %64, %cst_31 [1] : vector<16x128xf32> to vector<16xf32>
    %66 = vector.shape_cast %65 : vector<16xf32> to vector<16x1xf32>
    %67 = arith.addf %36, %66 : vector<16x1xf32>
    %c2_i32 = arith.constant 2 : i32
    %c0_32 = arith.constant 0 : index
    %c0_33 = arith.constant 0 : index
    %c0_34 = arith.constant 0 : index
    %68 = vector.load %arg11[%c0_32, %c0_33, %c0_34] : memref<1x16x1xf32, #tpu.memory_space<vmem>>, vector<1x16x1xf32>
    %69 = vector.shape_cast %68 : vector<1x16x1xf32> to vector<16x1xf32>
    %70 = vector.shape_cast %63 : vector<16x1xf32> to vector<1x16x1xf32>
    tpu.vector_store %arg11[%c0_32, %c0_33, %c0_34], %70 {strides = array<i32>} : memref<1x16x1xf32, #tpu.memory_space<vmem>>, vector<1x16x1xf32>,
    %c0_35 = arith.constant 0 : index
    %c0_36 = arith.constant 0 : index
    %c0_37 = arith.constant 0 : index
    %71 = vector.load %arg12[%c0_35, %c0_36, %c0_37] : memref<1x16x1xf32, #tpu.memory_space<vmem>>, vector<1x16x1xf32>
    %72 = vector.shape_cast %71 : vector<1x16x1xf32> to vector<16x1xf32>
    %73 = vector.shape_cast %67 : vector<16x1xf32> to vector<1x16x1xf32>
    tpu.vector_store %arg12[%c0_35, %c0_36, %c0_37], %73 {strides = array<i32>} : memref<1x16x1xf32, #tpu.memory_space<vmem>>, vector<1x16x1xf32>,
    return
  }
  func.func @transform_0(%arg0: i32, %arg1: i32) -> (i32, i32, i32) {
    %c1_i32 = arith.constant 1 : i32
    %c0_i32 = arith.constant 0 : i32
    return %arg0, %c1_i32, %arg1 : i32, i32, i32
  }
  func.func @transform_1(%arg0: i32, %arg1: i32) -> (i32, i32, i32) {
    %c0_i32 = arith.constant 0 : i32
    %c0_i32_0 = arith.constant 0 : i32
    return %arg0, %c0_i32, %arg1 : i32, i32, i32
  }
  func.func @transform_2(%arg0: i32, %arg1: i32) -> (i32, i32) {
    %c0_i32 = arith.constant 0 : i32
    %c0_i32_0 = arith.constant 0 : i32
    %c0_i32_1 = arith.constant 0 : i32
    return %c0_i32, %c0_i32_0 : i32, i32
  }
  func.func @transform_3(%arg0: i32, %arg1: i32) -> (i32, i32) {
    %c0_i32 = arith.constant 0 : i32
    %c0_i32_0 = arith.constant 0 : i32
    %c0_i32_1 = arith.constant 0 : i32
    return %c0_i32, %c0_i32_0 : i32, i32
  }
  func.func @transform_4(%arg0: i32, %arg1: i32) -> (i32, i32) {
    %c0_i32 = arith.constant 0 : i32
    %c0_i32_0 = arith.constant 0 : i32
    %c0_i32_1 = arith.constant 0 : i32
    return %c0_i32, %c0_i32_0 : i32, i32
  }
  func.func @transform_5(%arg0: i32, %arg1: i32) -> (i32, i32) {
    %c0_i32 = arith.constant 0 : i32
    %c0_i32_0 = arith.constant 0 : i32
    %c0_i32_1 = arith.constant 0 : i32
    return %c0_i32, %c0_i32_0 : i32, i32
  }
  func.func @transform_7(%arg0: i32, %arg1: i32) -> (i32, i32, i32) {
    %c0_i32 = arith.constant 0 : i32
    %c0_i32_0 = arith.constant 0 : i32
    return %arg0, %c0_i32, %arg1 : i32, i32, i32
  }
  func.func @transform_8(%arg0: i32, %arg1: i32) -> (i32, i32, i32) {
    %c0_i32 = arith.constant 0 : i32
    %c0_i32_0 = arith.constant 0 : i32
    return %arg0, %c0_i32, %arg1 : i32, i32, i32
  }
  func.func @transform_9(%arg0: i32, %arg1: i32) -> (i32, i32, i32) {
    %c2_i32 = arith.constant 2 : i32
    %0 = arith.muli %arg0, %c2_i32 : i32
    %1 = arith.addi %0, %arg1 : i32
    %c0_i32 = arith.constant 0 : i32
    %c0_i32_0 = arith.constant 0 : i32
    %c0_i32_1 = arith.constant 0 : i32
    return %1, %c0_i32, %c0_i32_0 : i32, i32, i32
  }
  func.func @transform_10(%arg0: i32, %arg1: i32) -> (i32, i32, i32) {
    %c2_i32 = arith.constant 2 : i32
    %0 = arith.muli %arg0, %c2_i32 : i32
    %1 = arith.addi %0, %arg1 : i32
    %c0_i32 = arith.constant 0 : i32
    %c0_i32_0 = arith.constant 0 : i32
    %c0_i32_1 = arith.constant 0 : i32
    return %1, %c0_i32, %c0_i32_0 : i32, i32, i32
  }
}

</mosaic_0001>

<bundles_post_ra>
// kernel: res2conv1d_relu_bn.7
= control target key start
LH: loop header
LB: loop body
LE: loop exit
PB: predicated region body
PF: predicated region fallthrough
CT: control target
= control target key end

     0   :  { %9 = vsyncpa [#allocation4], 0  ;;  %s757_s0 = inlined_call_operand.vmem [shape: f32[4,16,256], index: 0, kind: input, shape index: {}]   ;;  %s758_s1 = inlined_call_operand.vmem [shape: f32[16,1], index: 1, kind: input, shape index: {}]   ;;  %s759_s2 = inlined_call_operand.vmem [shape: f32[16,1], index: 2, kind: input, shape index: {}]   ;;  %s760_s3 = inlined_call_operand.hbm [shape: f32[4,64,256], index: 3, kind: input, shape index: {}, may-alias: {3,4}]   ;;  %s761_s4 = inlined_call_operand.hbm [shape: f32[4,64,256], index: 4, kind: output, shape index: {}, may-alias: {3,4}]  }
   0x1   :  { %11 = vsyncpa [#allocation4 + $0x1], 0  ;;  %s612_s15 = smov 0   ;;  %s614_s16 = smov 0  }
   0x2   :  { %s616_s17 = smov 0   ;;  %s618_s18 = smov 0  }
   0x3   :  { %s620_s19 = smov 0   ;;  %s622_s20 = smov 0  }
   0x4   :  { %s624_s21 = smov 0   ;;  %s626_s3 = smov 0  }
   0x5 LB: > { %s407_s22 = sadd.s32 4294967295, %s577_s3   ;;  %s408_s23 = sadd.s32 4294967294, %s577_s3   ;;  %s577_s3 = sphi %s626_s3, %s17_s3   ;;  %s573_s21 = sphi %s624_s21, %s771_s21   ;;  %s569_s20 = sphi %s622_s20, %s770_s20   ;;  %s565_s19 = sphi %s620_s19, %s769_s19   ;;  %s561_s18 = sphi %s618_s18, %s768_s18   ;;  %s557_s17 = sphi %s616_s17, %s767_s17   ;;  %s553_s16 = sphi %s614_s16, %s766_s16   ;;  %s549_s15 = sphi %s612_s15, %s765_s15  }
   0x6   : > { %s26_s24 = sadd.s32 1, %s569_s20  ;;  %s29_s25 = sadd.s32 1, %s573_s21 }
   0x7   : > { %p27_p0 = scmp.ge.s32.totalorder %s26_s24, 2  ;;  %p45_p1 = scmp.ne.s32.totalorder %s557_s17, %s553_s16 }
   0x8   : > { %p46_p2 = scmp.eq.s32.totalorder %s577_s3, 0  ;;  %p119_p5 = scmp.eq.s32.totalorder %s407_s22, 3 }
   0x9   : > { %s773_s24 = smov (%p27_p0, %s26_s24), 0  ;;  %s775_s25 = smov (!%p27_p0, %s29_s25), %s573_s21 }
   0xa   : > { %s34_s26 = ssub.s32 %s569_s20, %s773_s24  ;;  %p664_p3 = por %p46_p2, %p45_p1 }
   0xb   : > { %p31_p4 = scmp.ge.s32.totalorder %s775_s25, 2  ;;  %p124_p6 = scmp.ne.s32.totalorder %s553_s16, %s549_s15 }
   0xc   : > { %p125_p7 = scmp.eq.s32.totalorder %s408_s23, 3  ;;  %p672_p8 = por %p119_p5, %p45_p1 }
   0xd   : > { %s777_s25 = smov (%p31_p4, %s775_s25), 0  ;;  %s38_s6 = sadd.s32 1, %s557_s17 }
   0xe   : > { %p676_p9 = por %p125_p7, %p124_p6  ;;  %s33_s30 = ssub.s32 %s573_s21, %s777_s25 }
   0xf   : > { %s35_s5 = sor.u32 %s34_s26, %s33_s30  ;;  %p410_p11 = scmp.ge.s32.totalorder %s577_s3, 4 }
  0x10   : > { %p36_p10 = scmp.eq.s32.totalorder %s35_s5, 0 }
  0x11   : > { %147 = sbr.rel (%p410_p11) target bundleno = 32 (0x20), region = 24 }
  0x12   : > { %s684_s7 = scalar_select %p36_p10, %s557_s17, %s38_s6  }
  0x18   : > { %150 = sbr.rel (!%p664_p3) target bundleno = 32 (0x20), region = 28  ;;  %s152_s8 = sand.u32 (%p664_p3), 1, %s557_s17  }
  0x19   : > { %s423_s9 = sshll.u32 (%p664_p3), %s573_s21, 3  ;;  %s411_s10 = sshll.u32 (%p664_p3), %s152_s8, 5 }
  0x1a   : > { %s157_s11 = sadd.s32 (%p664_p3), %s569_s20, %s423_s9  ;;  %s154_s23 = scalar_lea.vmem (%p664_p3), [#allocation2], %s411_s10 }
  0x1b   : > { %s414_s12 = sshll.u32 (%p664_p3), %s157_s11, 3 }
  0x1c   : > { %s159_s22 = scalar_lea.vmem (%p664_p3), %s757_s0, %s414_s12 }
  0x1d   : > { %v193_v0 = vld [vmem:[%s159_s22] sm:$0xff] (%p664_p3)  ;;  %v195_v1 = vld [vmem:[%s159_s22 + $0x10] sm:$0xff] (%p664_p3) }
  0x1e   : > { %v197_v2 = vld [vmem:[%s159_s22 + $0x20] sm:$0xff] (%p664_p3)  ;;  %194 = vst [vmem:[%s154_s23] sm:$0xff] (%p664_p3), %v193_v0  ;;  %196 = vst [vmem:[%s154_s23 + $0x8] sm:$0xff] (%p664_p3), %v195_v1  ;;  %v199_v3 = vld [vmem:[%s159_s22 + $0x30] sm:$0xff] (%p664_p3) }
  0x1f   : > { %198 = vst [vmem:[%s154_s23 + $0x10] sm:$0xff] %v197_v2  ;;  %200 = vst [vmem:[%s154_s23 + $0x18] sm:$0xff] %v199_v3 }
  0x20 PF: > { %p415_p12 = scmp.ge.s32.totalorder %s577_s3, 1  ;;  %p205_p13 = scmp.lt.s32.totalorder %s577_s3, 5 }
  0x22   : > { %p206_p0 = pnand %p415_p12, %p205_p13 }
  0x23   : > { %v257_v4 = vld [vmem:[%s759_s2] sm:$0xff] (!%p206_p0)  ;;  %v579_v6 = vmov (!%p206_p0), 0   ;;  %v258_v7 = vld [vmem:[%s759_s2 + $0x8] sm:$0xff] (!%p206_p0)  ;;  %s212_s11 = sand.u32 (!%p206_p0), 1, %s553_s16  }
  0x24   : > { %209 = sbr.rel (%p206_p0) target bundleno = 185 (0xb9), region = 66  ;;  %v241_v5 = vld [vmem:[%s758_s1] sm:$0xff] (!%p206_p0)  ;;  %510 = vset.pattern.permute.xlu1 (!%p206_p0), %v579_v6  ;;  %509 = vset.pattern.permute.xlu0 (!%p206_p0), %v579_v6  ;;  %v242_v8 = vld [vmem:[%s758_s1 + $0x8] sm:$0xff] (!%p206_p0)  ;;  %s416_s12 = sshll.u32 (!%p206_p0), %s212_s11, 5 }
  0x25   : > { %261 = vperm.xlu1 (!%p206_p0), %510, %v257_v4   ;;  %245 = vperm.xlu0 (!%p206_p0), %509, %v241_v5   ;;  %s214_s13 = scalar_lea.vmem (!%p206_p0), [#allocation2], %s416_s12  ;;  %s234_s14 = scalar_lea.vmem (!%p206_p0), [#allocation3], %s416_s12 }
  0x26   : > { %v237_v9 = vld [vmem:[%s214_s13] sm:$0xff] (!%p206_p0)  ;;  %v239_v10 = vld [vmem:[%s214_s13 + $0x10] sm:$0xff] (!%p206_p0)  ;;  %v238_v15 = vld [vmem:[%s214_s13 + $0x8] sm:$0xff] (!%p206_p0)  ;;  %s278_s22 = scalar_lea.sflag (!%p206_p0), [#allocation4], %s212_s11 }
  0x27   : > { %v240_v16 = vld [vmem:[%s214_s13 + $0x18] sm:$0xff] (!%p206_p0) }
  0x29   : > { %266 = vperm.xlu1 (!%p206_p0), %510, %v258_v7   ;;  %250 = vperm.xlu0 (!%p206_p0), %509, %v242_v8  }
  0xa4   : > { %v262_v11 = vpop.permute.xlu1 %261  ;;  %v246_v12 = vpop.permute.xlu0 %245 }
  0xa5   : > { %v253_v13 = vmul.f32 %v246_v12, %v237_v9  ;;  %v255_v14 = vmul.f32 %v246_v12, %v239_v10 }
  0xa7   : > { %v269_v17 = vadd.f32 %v262_v11, %v253_v13  ;;  %v271_v18 = vadd.f32 %v262_v11, %v255_v14 }
  0xa8   : > { %v251_v19 = vpop.permute.xlu0 %250  ;;  %v267_v22 = vpop.permute.xlu1 %266 }
  0xa9   : > { %273 = vst [vmem:[%s234_s14] sm:$0xff] %v269_v17  ;;  %275 = vst [vmem:[%s234_s14 + $0x10] sm:$0xff] %v271_v18  ;;  %v254_v20 = vmul.f32 %v251_v19, %v238_v15  ;;  %v256_v21 = vmul.f32 %v251_v19, %v240_v16 }
  0xab   : > { %v270_v23 = vadd.f32 %v267_v22, %v254_v20  ;;  %v272_v24 = vadd.f32 %v267_v22, %v256_v21 }
  0xad   : > { %274 = vst [vmem:[%s234_s14 + $0x8] sm:$0xff] %v270_v23  ;;  %276 = vst [vmem:[%s234_s14 + $0x18] sm:$0xff] %v272_v24 }
  0xae   : > { %s419_s23 = sshll.u32 %s565_s19, 5  ;;  %s310_s26 = sshll.u32 %s234_s14, 4  ;;  %s311_s26 = int_to_ptr.vmem [resolvable:$true] %s310_s26 }
  0xaf   : > { %s364_s27 = sadd.s32 %s561_s18, %s419_s23  ;;  %s580_s9 = smov 256  }
  0xb0   : > { %s420_s30 = sshll.u32 %s364_s27, 7  ;;  %424 = sst [smem:[#allocation6]] (%p672_p8), %s580_s9 }
  0xb1   : > { %s366_s8 = scalar_lea.hbm %s761_s4, %s420_s30  ;;  %s581_s11 = smov 2048  }
  0xb2   : > { %s367_s10 = scalar_lea.hbm %s366_s8, 1024  ;;  %425 = sst [smem:[#allocation6 + $0x1]] (%p672_p8), %s581_s11 }
  0xb3   : > { %s582_s12 = smov 2   ;;  %s583_s19 = smov 128  }
  0xb4   : > { %426 = sst [smem:[#allocation6 + $0x2]] (%p672_p8), %s582_s12  ;;  %s584_s18 = smov 8  }
  0xb5   : > { %427 = sst [smem:[#allocation6 + $0x3]] (%p672_p8), %s583_s19  ;;  %s585_s13 = smov [#allocation5]  }
  0xb6   : > { %428 = sst [smem:[#allocation6 + $0x4]] (%p672_p8), %s580_s9  ;;  %s586_s14 = smov 0  }
  0xb7   : > { %429 = sst [smem:[#allocation6 + $0x5]] (%p672_p8), %s584_s18 }
  0xb8   : > { %430 = dma.general (%p672_p8), %s311_s26, 512, %s367_s10, %s278_s22, %s585_s13, [#allocation6], %s586_s14, 0  }
  0xb9 PF: > { %p436_p1 = scmp.ge.s32.totalorder %s577_s3, 2  ;;  %s338_s23 = sand.u32 1, %s549_s15  }
  0xba   : > { %s339_s27 = scalar_lea.sflag [#allocation4], %s338_s23 }
  0xbb   : > { %p433_p2 = pnand %p436_p1, %p676_p9 }
  0xbd   : > { %544 = dma.done.wait (!%p433_p2), %s339_s27, 512  }
  0xbe   : > { %546 = vsyncadd (!%p433_p2), %s339_s27, 4294966784  ;;  %s17_s3 = sadd.s32 1, %s577_s3   ;;  %s765_s15 = smov %s553_s16 }
  0xbf   : > { %p14_p3 = scmp.ge.s32.totalorder %s17_s3, 6   ;;  %s766_s16 = smov %s557_s17 }
  0xc0   : > { %s767_s17 = smov %s684_s7  ;;  %s768_s18 = smov %s569_s20 }
  0xc1   : > { %s769_s19 = smov %s573_s21  ;;  %s770_s20 = smov %s773_s24 }
  0xc2   : > { %s771_s21 = smov %s777_s25  ;;  %16 = sbr.rel (!%p14_p3) target bundleno = 5 (0x5), region = 115 }
  0xc9   :  { %344 = vsyncpa [#allocation4], 1 }
  0xca   :  { %346 = vsyncpa [#allocation4 + $0x1], 1 }

// kernel: res2conv1d_relu_bn.4
= control target key start
LH: loop header
LB: loop body
LE: loop exit
PB: predicated region body
PF: predicated region fallthrough
CT: control target
= control target key end

     0   :  { %s1542_s0 = inlined_call_operand.hbm [shape: f32[4,64,256], index: 0, kind: input, shape index: {}, may-alias: {0,1}]   ;;  %s1543_s1 = inlined_call_operand.hbm [shape: f32[4,64,256], index: 1, kind: input, shape index: {}, may-alias: {0,1}]   ;;  %s1544_s2 = inlined_call_operand.vmem [shape: f32[16,16], index: 2, kind: input, shape index: {}]   ;;  %s1545_s3 = inlined_call_operand.vmem [shape: f32[16,1], index: 3, kind: input, shape index: {}]   ;;  %s1546_s4 = inlined_call_operand.vmem [shape: f32[4,64,256], index: 4, kind: output, shape index: {0}]   ;;  %s1547_s5 = inlined_call_operand.vmem [shape: f32[4,16,256], index: 5, kind: output, shape index: {1}]   ;;  %s1548_s6 = inlined_call_operand.vmem [shape: f32[4,16,1], index: 6, kind: output, shape index: {2}]   ;;  %s1549_s7 = inlined_call_operand.vmem [shape: f32[4,16,1], index: 7, kind: output, shape index: {3}]  }
   0x1   :  { %1555 = sst [smem:[#allocation22_spill]] %s1542_s0 }
   0x2   :  { %13 = vsyncpa [#allocation3], 0 }
   0x3   :  { %15 = vsyncpa [#allocation3 + $0x1], 0 }
   0x4   :  { %16 = vsyncpa [#allocation5], 0 }
   0x5   :  { %18 = vsyncpa [#allocation5 + $0x1], 0  ;;  %s1320_s24 = smov 0   ;;  %s1322_s25 = smov 0  }
   0x6   :  { %s1324_s26 = smov 0   ;;  %s1326_s27 = smov 0  }
   0x7   :  { %s1328_s28 = smov 0   ;;  %s1330_s29 = smov 0  }
   0x8   :  { %s1332_s30 = smov 0   ;;  %s1334_s8 = smov 0  }
   0x9 LB: > { %1556 = sst [smem:[#allocation16_spill]] %s1245_s26  ;;  %s33_s9 = sadd.s32 1, %s1257_s29  ;;  %s1265_s8 = sphi %s1334_s8, %s24_s8   ;;  %s1261_s30 = sphi %s1332_s30, %s1571_s30   ;;  %s1257_s29 = sphi %s1330_s29, %s1570_s29   ;;  %s1253_s28 = sphi %s1328_s28, %s1574_s28   ;;  %s1249_s27 = sphi %s1326_s27, %s1568_s27   ;;  %s1245_s26 = sphi %s1324_s26, %s1567_s26   ;;  %s1241_s25 = sphi %s1322_s25, %s1573_s25   ;;  %s1237_s24 = sphi %s1320_s24, %s1572_s24  }
   0xa   : > { %1557 = sst [smem:[#allocation17_spill]] %s1257_s29  ;;  %p34_p0 = scmp.ge.s32.totalorder %s33_s9, 2 }
   0xb   : > { %1558 = sst [smem:[#allocation18_spill]] %s1261_s30  ;;  %s36_s10 = sadd.s32 1, %s1261_s30 }
   0xc   : > { %s1014_s11 = sadd.s32 4294967295, %s1265_s8   ;;  %p52_p1 = scmp.ne.s32.totalorder %s1245_s26, %s1241_s25 }
   0xd   : > { %s1576_s9 = smov (%p34_p0, %s33_s9), 0  ;;  %s1578_s10 = smov (!%p34_p0, %s36_s10), %s1261_s30 }
   0xe   : > { %1559 = sst [smem:[#allocation19_spill]] %s1576_s9  ;;  %s41_s12 = ssub.s32 %s1257_s29, %s1576_s9 }
   0xf   : > { %p53_p2 = scmp.eq.s32.totalorder %s1265_s8, 0  ;;  %p38_p3 = scmp.ge.s32.totalorder %s1578_s10, 2 }
  0x10   : > { %p58_p4 = scmp.ne.s32.totalorder %s1241_s25, %s1237_s24  ;;  %p59_p6 = scmp.eq.s32.totalorder %s1014_s11, 0 }
  0x11   : > { %p1373_p5 = por %p53_p2, %p52_p1  ;;  %s1580_s10 = smov (%p38_p3, %s1578_s10), 0 }
  0x12   : > { %1561 = sst [smem:[#allocation20_spill]] %s1580_s10  ;;  %p1379_p7 = por %p59_p6, %p58_p4 }
  0x13   : > { %p154_p8 = scmp.eq.s32.totalorder %s1014_s11, 3  ;;  %s40_s15 = ssub.s32 %s1261_s30, %s1580_s10 }
  0x14   : > { %s45_s16 = sadd.s32 1, %s1245_s26  ;;  %s42_s17 = sor.u32 %s41_s12, %s40_s15 }
  0x15   : > { %p1389_p9 = por %p154_p8, %p52_p1  ;;  %p43_p10 = scmp.eq.s32.totalorder %s42_s17, 0 }
  0x16   : > { %p1021_p11 = scmp.ge.s32.totalorder %s1265_s8, 4 }
  0x17   : > { %s1394_s19 = scalar_select %p43_p10, %s1245_s26, %s45_s16  }
  0x18   : > { %270 = sbr.rel (%p1021_p11) target bundleno = 60 (0x3c), region = 24 }
  0x19   : > { %1564 = sst [smem:[#allocation21_spill]] %s1394_s19 }
  0x1f   : > { %s1398_s20 = sand.u32 1, %s1245_s26   ;;  %s1065_s21 = sshll.u32 %s1261_s30, 5 }
  0x20   : > { %s1022_s22 = sshll.u32 %s1398_s20, 5  ;;  %s284_s23 = sadd.s32 %s1257_s29, %s1065_s21 }
  0x21   : > { %s1025_s24 = sshll.u32 %s284_s23, 7  ;;  %s1565_s0 = sld [smem:[#allocation22_spill]] }
  0x22   : > { %s278_s16 = scalar_lea.vmem [#allocation2], %s1022_s22  ;;  %s1267_s19 = smov 2048  }
  0x23   : > { %s299_s17 = sshll.u32 %s278_s16, 4  ;;  %1100 = sst [smem:[#allocation9]] (%p1373_p5), %s1267_s19  ;;  %s300_s17 = int_to_ptr.vmem [resolvable:$true] %s299_s17 }
  0x24   : > { %s1099_s10 = scalar_select %p1373_p5, [#allocation0], [#allocation12] }
  0x25   : > { %s1268_s30 = smov 256   ;;  %s1269_s21 = smov 2  }
  0x26   : > { %s291_s9 = sld [smem:[%s1099_s10]]   ;;  %s1270_s23 = smov 128  }
  0x27   : > { %s286_s15 = scalar_lea.hbm %s1565_s0, %s1025_s24  ;;  %1101 = sst [smem:[#allocation9 + $0x1]] (%p1373_p5), %s1268_s30 }
  0x28   : > { %1102 = sst [smem:[#allocation9 + $0x2]] (%p1373_p5), %s1269_s21  ;;  %s1271_s11 = smov 8  }
  0x29   : > { %1103 = sst [smem:[#allocation9 + $0x3]] (%p1373_p5), %s1268_s30  ;;  %s275_s16 = scalar_lea.sflag [#allocation3], %s1398_s20 }
  0x2a   : > { %1104 = sst [smem:[#allocation9 + $0x4]] (%p1373_p5), %s1270_s23  ;;  %s1272_s0 = smov [#allocation8]  }
  0x2b   : > { %1105 = sst [smem:[#allocation9 + $0x5]] (%p1373_p5), %s1271_s11 }
  0x2c   : > { %s1026_s10 = sshll.u32 %s291_s9, 26 }
  0x2d   : > { %s1027_s12 = sadd.s32 134217728, %s1026_s10 }
  0x2e   : > { %1106 = dma.general (%p1373_p5), %s286_s15, 512, %s300_s17, %s275_s16, %s1272_s0, [#allocation9], %s1027_s12, 0  }
  0x2f   : > { %s884_s30 = scalar_lea.hbm %s1543_s1, %s1025_s24  ;;  %s326_s23 = scalar_lea.vmem [#allocation4], %s1022_s22 }
  0x30   : > { %s885_s21 = scalar_lea.hbm %s884_s30, 1536  ;;  %s348_s11 = sshll.u32 %s326_s23, 4  ;;  %s349_s11 = int_to_ptr.vmem [resolvable:$true] %s348_s11 }
  0x31   : > { %s1107_s9 = scalar_select %p1373_p5, [#allocation0], [#allocation13] }
  0x32   : > { %s1273_s26 = smov 2048   ;;  %s1274_s0 = smov 256  }
  0x33   : > { %s340_s10 = sld [smem:[%s1107_s9]]   ;;  %s1275_s29 = smov 2  }
  0x34   : > { %1108 = sst [smem:[#allocation11]] (%p1373_p5), %s1273_s26  ;;  %s1276_s24 = smov 128  }
  0x35   : > { %1109 = sst [smem:[#allocation11 + $0x1]] (%p1373_p5), %s1274_s0  ;;  %s1277_s22 = smov 8  }
  0x36   : > { %1110 = sst [smem:[#allocation11 + $0x2]] (%p1373_p5), %s1275_s29  ;;  %s323_s12 = scalar_lea.sflag [#allocation5], %s1398_s20 }
  0x37   : > { %1111 = sst [smem:[#allocation11 + $0x3]] (%p1373_p5), %s1274_s0  ;;  %s1278_s16 = smov [#allocation10]  }
  0x38   : > { %1112 = sst [smem:[#allocation11 + $0x4]] (%p1373_p5), %s1276_s24 }
  0x39   : > { %1113 = sst [smem:[#allocation11 + $0x5]] (%p1373_p5), %s1277_s22  ;;  %s1031_s15 = sshll.u32 %s340_s10, 26 }
  0x3a   : > { %s1032_s17 = sadd.s32 134217728, %s1031_s15 }
  0x3b   : > { %1114 = dma.general (%p1373_p5), %s885_s21, 512, %s349_s11, %s323_s12, %s1278_s16, [#allocation11], %s1032_s17, 0  }
  0x3c PF: > { %p1033_p12 = scmp.ge.s32.totalorder %s1265_s8, 1  ;;  %p369_p13 = scmp.lt.s32.totalorder %s1265_s8, 5 }
  0x3e   : > { %p370_p0 = pnand %p1033_p12, %p369_p13 }
  0x3f   : > { %s375_s26 = sand.u32 (!%p370_p0), 1, %s1241_s25  }
  0x40   : > { %373 = sbr.rel (%p370_p0) target bundleno = 475 (0x1db), region = 36  ;;  %s1446_s19 = sshll.u32 (!%p370_p0), %s375_s26, 5 }
  0x41   : > { %s376_s30 = scalar_lea.sflag (!%p370_p0), [#allocation3], %s375_s26  ;;  %s379_s23 = scalar_lea.vmem (!%p370_p0), [#allocation2], %s1446_s19 }
  0x47   : > { %1228 = dma.done.wait (%p1379_p7), %s376_s30, 512  }
  0x48   : > { %1230 = vsyncadd (%p1379_p7), %s376_s30, 4294966784  ;;  %s385_s13 = scalar_lea.sflag [#allocation5], %s375_s26  ;;  %s388_s20 = scalar_lea.vmem [#allocation4], %s1446_s19 }
  0x49   : > { %1232 = dma.done.wait (%p1379_p7), %s385_s13, 512  }
  0x4a   : > { %1234 = vsyncadd (%p1379_p7), %s385_s13, 4294966784  ;;  %v1279_v0 = vmov 0   ;;  %v463_v1 = vld [vmem:[%s388_s20] sm:$0xff]  ;;  %v464_v2 = vld [vmem:[%s388_s20 + $0x8] sm:$0xff]  ;;  %vm487_vm0 = vcmask 130048   ;;  %s1459_s21 = scalar_lea.vmem [#allocation6], %s1446_s19 }
  0x4b   : > { %1194 = vset.pattern.permute.xlu0 %v1279_v0  ;;  %v465_v3 = vld [vmem:[%s388_s20 + $0x10] sm:$0xff]  ;;  %v466_v4 = vld [vmem:[%s388_s20 + $0x18] sm:$0xff]  ;;  %467 = vst [vmem:[%s1459_s21] sm:$0xff] %v463_v1  ;;  %468 = vst [vmem:[%s1459_s21 + $0x8] sm:$0xff] %v464_v2  ;;  %s1482_s15 = scalar_lea.vmem [#allocation7], %s1446_s19  ;;  %s1038_s17 = sshll.u32 %s1253_s28, 1  ;;  %vm684_vm1 = vcmask 7168  }
  0x4c   : > { %469 = vst [vmem:[%s1459_s21 + $0x10] sm:$0xff] %v465_v3  ;;  %v475_v5 = vld [vmem:[%s379_s23] sm:$0xff]  ;;  %v476_v6 = vld [vmem:[%s379_s23 + $0x8] sm:$0xff]  ;;  %470 = vst [vmem:[%s1459_s21 + $0x18] sm:$0xff] %v466_v4  ;;  %s446_s12 = sadd.s32 %s1249_s27, %s1038_s17  ;;  %s1054_s14 = sshll.u32 (%p1389_p9), %s1253_s28, 5 }
  0x4d   : > { %v1091_v7 = vpack.c.bf16 %v476_v6, %v475_v5  ;;  %v1046_v8 = vld [vmem:[%s379_s23 + $0x10] sm:$0xff]  ;;  %v1047_v9 = vld [vmem:[%s379_s23 + $0x18] sm:$0xff]  ;;  %v471_v10 = vld [vmem:[%s1544_s2] sm:$0xff]  ;;  %p447_p1 = scmp.lt.s32.totalorder %s446_s12, 3  ;;  %s919_s11 = sadd.s32 (%p1389_p9), %s1249_s27, %s1054_s14 }
  0x4e   : > { %v1095_v11 = vpack.c.bf16 %v1047_v9, %v1046_v8  ;;  %1081 = vmatprep.mubr.msk.f32.mxu0 %vm487_vm0, %v471_v10  ;;  %1088 = vmatprep.mubr.msk.f32.mxu1 %vm487_vm0, %v471_v10  ;;  %v473_v12 = vld [vmem:[%s1545_s3] sm:$0xff]  ;;  %v472_v13 = vld [vmem:[%s1544_s2 + $0x8] sm:$0xff]  ;;  %s1055_s9 = sshll.u32 (%p1389_p9), %s919_s11, 3 }
  0x4f   : > { %1092 = vmatprep.subr.bf16.mxu0 %v1091_v7  ;;  %479 = vperm.xlu0 %1194, %v473_v12   ;;  %v474_v14 = vld [vmem:[%s1545_s3 + $0x8] sm:$0xff]  ;;  %s1582_s12 = smov (!%p447_p1, %s446_s12), 3  ;;  %s921_s29 = scalar_lea.vmem (%p1389_p9), %s1546_s4, %s1055_s9 }
  0x50   : > { %1096 = vmatprep.subr.bf16.mxu1 %v1095_v11  ;;  %1094 = vmatpush3.bf16.msra.mxu0 %v1091_v7  ;;  %s1066_s16 = sshll.u32 %s1582_s12, 4 }
  0x51   : > { %1098 = vmatpush3.bf16.msra.mxu1 %v1095_v11  ;;  %s451_s30 = scalar_lea.vmem %s1548_s6, %s1066_s16  ;;  %s460_s20 = scalar_lea.vmem %s1549_s7, %s1066_s16 }
  0x52   : > { %v753_v45 = vld [vmem:[%s1459_s21] sm:$0xff] (%p1389_p9)  ;;  %v755_v46 = vld [vmem:[%s1459_s21 + $0x8] sm:$0xff] (%p1389_p9) }
  0x53   : > { %1082 = vmatmul.mubr.msk.f32.vlgmr.msra.gmra.mrb[0].mxu0 %vm487_vm0, %v472_v13  ;;  %484 = vperm.xlu0 %1194, %v474_v14   ;;  %v757_v47 = vld [vmem:[%s1459_s21 + $0x10] sm:$0xff] (%p1389_p9)  ;;  %v759_v48 = vld [vmem:[%s1459_s21 + $0x18] sm:$0xff] (%p1389_p9)  ;;  %1056 = vst [vmem:[%s921_s29 + $0x60] sm:$0xff] (%p1389_p9), %v753_v45  ;;  %1057 = vst [vmem:[%s921_s29 + $0x70] sm:$0xff] (%p1389_p9), %v755_v46 }
  0x54   : > { %1089 = vmatmul.mubr.msk.f32.vlgmr.msra.gmra.mrb[0].mxu1 %vm487_vm0, %v472_v13  ;;  %1058 = vst [vmem:[%s921_s29 + $0xe0] sm:$0xff] (%p1389_p9), %v757_v47  ;;  %1059 = vst [vmem:[%s921_s29 + $0xf0] sm:$0xff] (%p1389_p9), %v759_v48 }
  0xce   : > { %v480_v15 = vpop.permute.xlu0 %479 }
  0xd2   : > { %v485_v16 = vpop.permute.xlu0 %484 }
 0x126   : > { %v1083_v17 = vpop.f32.mrb[0].mxu0 }
 0x127   : > { %v566_v18 = vadd.f32 %v1083_v17, %v485_v16  ;;  %v1090_v19 = vpop.f32.mrb[0].mxu1  ;;  %v560_v20 = vpop.f32.mrb[1].mxu0 }
 0x128   : > { %v662_v21 = vadd.f32 %v1090_v19, %v485_v16  ;;  %v561_v22 = vadd.f32 %v560_v20, %v480_v15  ;;  %v656_v23 = vpop.f32.mrb[1].mxu1 }
 0x129   : > { %v570_v24 = vmax.f32 %v566_v18, 0.0  ;;  %v657_v25 = vadd.f32 %v656_v23, %v480_v15 }
 0x12a   : > { %v666_v26 = vmax.f32 %v662_v21, 0.0  ;;  %v569_v27 = vmax.f32 %v561_v22, 0.0 }
 0x12b   : > { %572 = vst [vmem:[%s1482_s15 + $0x8] sm:$0xff] %v570_v24  ;;  %v665_v28 = vmax.f32 %v657_v25, 0.0  ;;  %575 = vadd.xlane.f32.xlu1 %v570_v24  ;;  %v580_v30 = vmul.f32 %v570_v24, %v570_v24 }
 0x12c   : > { %1051 = vst [vmem:[%s1482_s15 + $0x18] sm:$0xff] %v666_v26  ;;  %571 = vst [vmem:[%s1482_s15] sm:$0xff] %v569_v27  ;;  %v579_v29 = vmul.f32 %v569_v27, %v569_v27  ;;  %v677_v32 = vmul.f32 %v666_v26, %v666_v26 }
 0x12d   : > { %1050 = vst [vmem:[%s1482_s15 + $0x10] sm:$0xff] %v665_v28  ;;  %v676_v31 = vmul.f32 %v665_v28, %v665_v28 }
 0x12e   : > { %581 = vadd.xlane.f32.xlu0 %v579_v29 }
 0x12f   : > { %573 = vadd.xlane.f32.xlu1 %v569_v27 }
 0x133   : > { %583 = vadd.xlane.f32.xlu1 %v580_v30 }
 0x137   : > { %670 = vadd.xlane.f32.xlu1 %v665_v28 }
 0x13b   : > { %672 = vadd.xlane.f32.xlu1 %v666_v26 }
 0x13f   : > { %678 = vadd.xlane.f32.xlu1 %v676_v31 }
 0x143   : > { %680 = vadd.xlane.f32.xlu1 %v677_v32 }
 0x1b8   : > { %v576_v33 = vpop.xlane.xlu1 %575 }
 0x1bb   : > { %v582_v40 = vpop.xlane.xlu0 %581 }
 0x1bc   : > { %v574_v34 = vpop.xlane.xlu1 %573 }
 0x1c0   : > { %v584_v35 = vpop.xlane.xlu1 %583 }
 0x1c4   : > { %v671_v36 = vpop.xlane.xlu1 %670 }
 0x1c5   : > { %v674_v37 = vadd.f32 %v671_v36, %v574_v34 }
 0x1c7   : > { %685 = vst.msk [vmem:[%s451_s30] sm:$0xff] %vm684_vm1, %v674_v37 }
 0x1c8   : > { %v673_v38 = vpop.xlane.xlu1 %672 }
 0x1c9   : > { %v675_v39 = vadd.f32 %v673_v38, %v576_v33 }
 0x1cb   : > { %686 = vst.msk [vmem:[%s451_s30 + $0x8] sm:$0xff] %vm684_vm1, %v675_v39 }
 0x1cc   : > { %v679_v41 = vpop.xlane.xlu1 %678 }
 0x1cd   : > { %v682_v42 = vadd.f32 %v679_v41, %v582_v40  ;;  %713 = sbr.rel (!%p1389_p9) target bundleno = 468 (0x1d4), region = 48 }
 0x1cf   : > { %687 = vst.msk [vmem:[%s460_s20] sm:$0xff] %vm684_vm1, %v682_v42 }
 0x1d0   : > { %v681_v43 = vpop.xlane.xlu1 %680 }
 0x1d1   : > { %v683_v44 = vadd.f32 %v681_v43, %v584_v35 }
 0x1d3   : > { %688 = vst.msk [vmem:[%s460_s20 + $0x8] sm:$0xff] %vm684_vm1, %v683_v44 }
 0x1d4 PF: > { %766 = sbr.rel (!%p1389_p9) target bundleno = 475 (0x1db), region = 86  ;;  %s1068_s21 = sshll.u32 (%p1389_p9), %s1253_s28, 3  ;;  %v805_v49 = vld [vmem:[%s1482_s15] sm:$0xff] (%p1389_p9)  ;;  %v807_v50 = vld [vmem:[%s1482_s15 + $0x8] sm:$0xff] (%p1389_p9)  ;;  %v809_v51 = vld [vmem:[%s1482_s15 + $0x10] sm:$0xff] (%p1389_p9) }
 0x1d5   : > { %s769_s24 = sadd.s32 (%p1389_p9), %s1249_s27, %s1068_s21  ;;  %v811_v52 = vld [vmem:[%s1482_s15 + $0x18] sm:$0xff] (%p1389_p9) }
 0x1d6   : > { %s1062_s22 = sshll.u32 (%p1389_p9), %s769_s24, 3 }
 0x1d7   : > { %s771_s16 = scalar_lea.vmem (%p1389_p9), %s1547_s5, %s1062_s22 }
 0x1d8   : > { %806 = vst [vmem:[%s771_s16] sm:$0xff] (%p1389_p9), %v805_v49  ;;  %808 = vst [vmem:[%s771_s16 + $0x10] sm:$0xff] (%p1389_p9), %v807_v50 }
 0x1d9   : > { %810 = vst [vmem:[%s771_s16 + $0x20] sm:$0xff] (%p1389_p9), %v809_v51  ;;  %812 = vst [vmem:[%s771_s16 + $0x30] sm:$0xff] (%p1389_p9), %v811_v52 }
 0x1db PF: > { %s24_s8 = sadd.s32 1, %s1265_s8   ;;  %s1566_s28 = sld [smem:[#allocation16_spill]] }
 0x1dc   : > { %p21_p2 = scmp.ge.s32.totalorder %s24_s8, 6   ;;  %s1567_s26 = sld [smem:[#allocation21_spill]] }
 0x1dd   : > { %s1568_s27 = sld [smem:[#allocation17_spill]]  ;;  %s1569_s18 = sld [smem:[#allocation18_spill]] }
 0x1de   : > { %s1570_s29 = sld [smem:[#allocation19_spill]]  ;;  %s1571_s30 = sld [smem:[#allocation20_spill]] }
 0x1df   : > { %s1572_s24 = smov %s1241_s25  ;;  %23 = sbr.rel (!%p21_p2) target bundleno = 9 (0x9), region = 213 }
 0x1e1   : > { %s1573_s25 = smov %s1566_s28 }
 0x1e3   : > { %s1574_s28 = smov %s1569_s18 }
 0x1e6   :  { %865 = vsyncpa [#allocation3], 1 }
 0x1e7   :  { %867 = vsyncpa [#allocation3 + $0x1], 1 }
 0x1e8   :  { %868 = vsyncpa [#allocation5], 1 }
 0x1e9   :  { %870 = vsyncpa [#allocation5 + $0x1], 1 }

// kernel: res2conv1d_relu_bn.6
= control target key start
LH: loop header
LB: loop body
LE: loop exit
PB: predicated region body
PF: predicated region fallthrough
CT: control target
= control target key end

     0   :  { %s1361_s13 = smov 0   ;;  %s1363_s14 = smov 0   ;;  %s1544_s0 = inlined_call_operand.vmem [shape: f32[4,64,256], index: 0, kind: input, shape index: {}]   ;;  %s1545_s1 = inlined_call_operand.vmem [shape: f32[4,16,256], index: 1, kind: input, shape index: {}]   ;;  %s1546_s2 = inlined_call_operand.vmem [shape: f32[16,1], index: 2, kind: input, shape index: {}]   ;;  %s1547_s3 = inlined_call_operand.vmem [shape: f32[16,1], index: 3, kind: input, shape index: {}]   ;;  %s1548_s4 = inlined_call_operand.vmem [shape: f32[16,16], index: 4, kind: input, shape index: {}]   ;;  %s1549_s5 = inlined_call_operand.vmem [shape: f32[16,1], index: 5, kind: input, shape index: {}]   ;;  %s1550_s6 = inlined_call_operand.vmem [shape: f32[4,64,256], index: 6, kind: input, shape index: {}, may-alias: {6,7}]   ;;  %s1551_s7 = inlined_call_operand.vmem [shape: f32[4,64,256], index: 7, kind: output, shape index: {0}, may-alias: {6,7}]   ;;  %s1552_s8 = inlined_call_operand.vmem [shape: f32[4,16,256], index: 8, kind: output, shape index: {1}]   ;;  %s1553_s9 = inlined_call_operand.vmem [shape: f32[4,16,1], index: 9, kind: output, shape index: {2}]   ;;  %s1554_s10 = inlined_call_operand.vmem [shape: f32[4,16,1], index: 10, kind: output, shape index: {3}]  }
   0x1   :  { %s1365_s15 = smov 0   ;;  %s1367_s16 = smov 0  }
   0x2   :  { %s1369_s6 = smov 0   ;;  %s1371_s17 = smov 0  }
   0x3   :  { %s1373_s18 = smov 0  }
   0x4 LB: > { %s30_s19 = sadd.s32 1, %s1295_s6  ;;  %s33_s20 = sadd.s32 1, %s1299_s17  ;;  %s1303_s18 = sphi %s1373_s18, %s21_s18   ;;  %s1299_s17 = sphi %s1371_s17, %s1565_s17   ;;  %s1295_s6 = sphi %s1369_s6, %s1564_s6   ;;  %s1291_s16 = sphi %s1367_s16, %s1563_s16   ;;  %s1287_s15 = sphi %s1365_s15, %s1562_s15   ;;  %s1283_s14 = sphi %s1363_s14, %s1561_s14   ;;  %s1279_s13 = sphi %s1361_s13, %s1560_s13  }
   0x5   : > { %p31_p0 = scmp.ge.s32.totalorder %s30_s19, 2  ;;  %s1101_s21 = sadd.s32 4294967295, %s1303_s18  }
   0x6   : > { %p49_p1 = scmp.ne.s32.totalorder %s1283_s14, %s1279_s13  ;;  %p50_p2 = scmp.eq.s32.totalorder %s1303_s18, 0 }
   0x7   : > { %s1567_s19 = smov (%p31_p0, %s30_s19), 0  ;;  %s1569_s20 = smov (!%p31_p0, %s33_s20), %s1299_s17 }
   0x8   : > { %p35_p3 = scmp.ge.s32.totalorder %s1569_s20, 2  ;;  %p193_p4 = scmp.eq.s32.totalorder %s1101_s21, 3 }
   0x9   : > { %s38_s22 = ssub.s32 %s1295_s6, %s1567_s19  ;;  %p1407_p5 = por %p50_p2, %p49_p1 }
   0xa   : > { %s1571_s20 = smov (%p35_p3, %s1569_s20), 0  ;;  %p1413_p6 = por %p193_p4, %p49_p1 }
   0xb   : > { %1557 = sst [smem:[#allocation6_spill]] %s1571_s20  ;;  %s37_s25 = ssub.s32 %s1299_s17, %s1571_s20 }
   0xc   : > { %s39_s26 = sor.u32 %s38_s22, %s37_s25  ;;  %s42_s27 = sadd.s32 1, %s1283_s14 }
   0xd   : > { %p40_p7 = scmp.eq.s32.totalorder %s39_s26, 0  ;;  %p1108_p8 = scmp.ge.s32.totalorder %s1303_s18, 4 }
   0xf   : > { %s1421_s28 = scalar_select %p40_p7, %s1283_s14, %s42_s27  }
  0x10   : > { %315 = sbr.rel (%p1108_p8) target bundleno = 39 (0x27), region = 32 }
  0x17   : > { %318 = sbr.rel (!%p1407_p5) target bundleno = 31 (0x1f), region = 36  ;;  %s320_s29 = sand.u32 (%p1407_p5), 1, %s1283_s14  }
  0x18   : > { %s1110_s30 = sshll.u32 (%p1407_p5), %s1299_s17, 5  ;;  %s1109_s11 = sshll.u32 (%p1407_p5), %s320_s29, 5 }
  0x19   : > { %s965_s12 = sadd.s32 (%p1407_p5), %s1295_s6, %s1110_s30  ;;  %s322_s26 = scalar_lea.vmem (%p1407_p5), [#allocation2], %s1109_s11 }
  0x1a   : > { %s1111_s21 = sshll.u32 (%p1407_p5), %s965_s12, 3 }
  0x1b   : > { %s967_s25 = scalar_lea.vmem (%p1407_p5), %s1544_s0, %s1111_s21 }
  0x1c   : > { %v1112_v0 = vld [vmem:[%s967_s25 + $0x40] sm:$0xff] (%p1407_p5)  ;;  %v1113_v1 = vld [vmem:[%s967_s25 + $0x50] sm:$0xff] (%p1407_p5) }
  0x1d   : > { %v1114_v2 = vld [vmem:[%s967_s25 + $0xc0] sm:$0xff] (%p1407_p5)  ;;  %363 = vst [vmem:[%s322_s26] sm:$0xff] (%p1407_p5), %v1112_v0  ;;  %365 = vst [vmem:[%s322_s26 + $0x8] sm:$0xff] (%p1407_p5), %v1113_v1  ;;  %v1115_v3 = vld [vmem:[%s967_s25 + $0xd0] sm:$0xff] (%p1407_p5) }
  0x1e   : > { %367 = vst [vmem:[%s322_s26 + $0x10] sm:$0xff] %v1114_v2  ;;  %369 = vst [vmem:[%s322_s26 + $0x18] sm:$0xff] %v1115_v3 }
  0x1f PF: > { %375 = sbr.rel (!%p1407_p5) target bundleno = 39 (0x27), region = 74  ;;  %s377_s27 = sand.u32 (%p1407_p5), 1, %s1283_s14  }
  0x20   : > { %s1156_s29 = sshll.u32 (%p1407_p5), %s1299_s17, 3  ;;  %s1116_s20 = sshll.u32 (%p1407_p5), %s377_s27, 5 }
  0x21   : > { %s382_s30 = sadd.s32 (%p1407_p5), %s1295_s6, %s1156_s29  ;;  %s379_s25 = scalar_lea.vmem (%p1407_p5), [#allocation3], %s1116_s20 }
  0x22   : > { %s1119_s12 = sshll.u32 (%p1407_p5), %s382_s30, 3 }
  0x23   : > { %s384_s11 = scalar_lea.vmem (%p1407_p5), %s1545_s1, %s1119_s12 }
  0x24   : > { %v418_v4 = vld [vmem:[%s384_s11] sm:$0xff] (%p1407_p5)  ;;  %v420_v5 = vld [vmem:[%s384_s11 + $0x10] sm:$0xff] (%p1407_p5) }
  0x25   : > { %v422_v6 = vld [vmem:[%s384_s11 + $0x20] sm:$0xff] (%p1407_p5)  ;;  %419 = vst [vmem:[%s379_s25] sm:$0xff] (%p1407_p5), %v418_v4  ;;  %421 = vst [vmem:[%s379_s25 + $0x8] sm:$0xff] (%p1407_p5), %v420_v5  ;;  %v424_v7 = vld [vmem:[%s384_s11 + $0x30] sm:$0xff] (%p1407_p5) }
  0x26   : > { %423 = vst [vmem:[%s379_s25 + $0x10] sm:$0xff] %v422_v6  ;;  %425 = vst [vmem:[%s379_s25 + $0x18] sm:$0xff] %v424_v7 }
  0x27 PF: > { %p1120_p9 = scmp.ge.s32.totalorder %s1303_s18, 1  ;;  %p430_p10 = scmp.lt.s32.totalorder %s1303_s18, 5 }
  0x29   : > { %p431_p11 = pnand %p1120_p9, %p430_p10 }
  0x2a   : > { %v524_v8 = vld [vmem:[%s1547_s3] sm:$0xff] (!%p431_p11)  ;;  %v1305_v10 = vmov (!%p431_p11), 0   ;;  %v525_v11 = vld [vmem:[%s1547_s3 + $0x8] sm:$0xff] (!%p431_p11)  ;;  %vm572_vm0 = vcmask (!%p431_p11), 130048   ;;  %s437_s29 = sand.u32 (!%p431_p11), 1, %s1279_s13   ;;  %s1125_s25 = sshll.u32 (!%p431_p11), %s1291_s16, 1 }
  0x2b   : > { %434 = sbr.rel (%p431_p11) target bundleno = 572 (0x23c), region = 112  ;;  %v522_v9 = vld [vmem:[%s1546_s2] sm:$0xff] (!%p431_p11)  ;;  %1248 = vset.pattern.permute.xlu1 (!%p431_p11), %v1305_v10  ;;  %1247 = vset.pattern.permute.xlu0 (!%p431_p11), %v1305_v10  ;;  %v523_v12 = vld [vmem:[%s1546_s2 + $0x8] sm:$0xff] (!%p431_p11)  ;;  %s1466_s20 = sshll.u32 (!%p431_p11), %s437_s29, 5  ;;  %vm781_vm1 = vcmask (!%p431_p11), 7168  }
  0x2c   : > { %546 = vperm.xlu1 (!%p431_p11), %1248, %v524_v8   ;;  %534 = vperm.xlu0 (!%p431_p11), %1247, %v522_v9   ;;  %v529_v13 = vld [vmem:[%s1549_s5 + $0x8] sm:$0xff] (!%p431_p11)  ;;  %v528_v14 = vld [vmem:[%s1549_s5] sm:$0xff] (!%p431_p11)  ;;  %s446_s30 = scalar_lea.vmem (!%p431_p11), [#allocation3], %s1466_s20  ;;  %s1470_s12 = scalar_lea.vmem (!%p431_p11), [#allocation4], %s1466_s20 }
  0x2d   : > { %v526_v15 = vld [vmem:[%s1548_s4] sm:$0xff] (!%p431_p11)  ;;  %v1133_v17 = vld [vmem:[%s446_s30 + $0x10] sm:$0xff] (!%p431_p11)  ;;  %v531_v22 = vld [vmem:[%s446_s30 + $0x8] sm:$0xff] (!%p431_p11)  ;;  %s439_s13 = scalar_lea.vmem (!%p431_p11), [#allocation2], %s1466_s20  ;;  %s1483_s11 = scalar_lea.vmem (!%p431_p11), [#allocation5], %s1466_s20 }
  0x2e   : > { %1172 = vmatprep.mubr.msk.f32.mxu0 (!%p431_p11), %vm572_vm0, %v526_v15  ;;  %1179 = vmatprep.mubr.msk.f32.mxu1 (!%p431_p11), %vm572_vm0, %v526_v15  ;;  %v530_v16 = vld [vmem:[%s446_s30] sm:$0xff] (!%p431_p11)  ;;  %v1134_v23 = vld [vmem:[%s446_s30 + $0x18] sm:$0xff] (!%p431_p11)  ;;  %v559_v31 = vld [vmem:[%s439_s13 + $0x8] sm:$0xff] (!%p431_p11)  ;;  %s505_s23 = sadd.s32 (!%p431_p11), %s1287_s15, %s1125_s25 }
  0x2f   : > { %v558_v29 = vld [vmem:[%s439_s13] sm:$0xff] (!%p431_p11)  ;;  %v1137_v32 = vld [vmem:[%s439_s13 + $0x10] sm:$0xff] (!%p431_p11)  ;;  %v1138_v33 = vld [vmem:[%s439_s13 + $0x18] sm:$0xff] (!%p431_p11)  ;;  %p506_p12 = scmp.lt.s32.totalorder (!%p431_p11), %s505_s23, 3 }
  0x30   : > { %551 = vperm.xlu1 (!%p431_p11), %1248, %v525_v11   ;;  %539 = vperm.xlu0 (!%p431_p11), %1247, %v523_v12   ;;  %v527_v42 = vld [vmem:[%s1548_s4 + $0x8] sm:$0xff] (!%p431_p11) }
  0x32   : > { %s1573_s23 = smov (!%p506_p12, %s505_s23), 3  ;;  %s1145_s22 = sshll.u32 (%p1413_p6), %s1291_s16, 5 }
  0x33   : > { %s1157_s26 = sshll.u32 %s1573_s23, 4  ;;  %s1004_s25 = sadd.s32 (%p1413_p6), %s1287_s15, %s1145_s22 }
  0x34   : > { %569 = vperm.xlu1 %1248, %v529_v13   ;;  %564 = vperm.xlu0 %1247, %v528_v14   ;;  %s510_s20 = scalar_lea.vmem %s1553_s9, %s1157_s26  ;;  %s519_s21 = scalar_lea.vmem %s1554_s10, %s1157_s26 }
  0x35   : > { %s1146_s23 = sshll.u32 (%p1413_p6), %s1004_s25, 3 }
  0x36   : > { %s1006_s29 = scalar_lea.vmem (%p1413_p6), %s1551_s7, %s1146_s23 }
  0xab   : > { %v547_v18 = vpop.permute.xlu1 %546  ;;  %v535_v19 = vpop.permute.xlu0 %534 }
  0xac   : > { %v542_v20 = vmul.f32 %v535_v19, %v530_v16  ;;  %v675_v21 = vmul.f32 %v1133_v17, %v535_v19 }
  0xae   : > { %v554_v24 = vadd.f32 %v547_v18, %v542_v20  ;;  %v677_v25 = vadd.f32 %v675_v21, %v547_v18 }
  0xaf   : > { %v540_v26 = vpop.permute.xlu0 %539  ;;  %v552_v30 = vpop.permute.xlu1 %551 }
  0xb0   : > { %556 = vst [vmem:[%s1470_s12] sm:$0xff] %v554_v24  ;;  %1135 = vst [vmem:[%s1470_s12 + $0x10] sm:$0xff] %v677_v25  ;;  %v543_v27 = vmul.f32 %v540_v26, %v531_v22  ;;  %v676_v28 = vmul.f32 %v1134_v23, %v540_v26  ;;  %v560_v36 = vadd.f32 %v558_v29, %v554_v24 }
  0xb1   : > { %v685_v38 = vadd.f32 %v1137_v32, %v677_v25 }
  0xb2   : > { %v555_v34 = vadd.f32 %v552_v30, %v543_v27  ;;  %v678_v35 = vadd.f32 %v676_v28, %v552_v30 }
  0xb3   : > { %v570_v43 = vpop.permute.xlu1 %569  ;;  %v565_v44 = vpop.permute.xlu0 %564 }
  0xb4   : > { %557 = vst [vmem:[%s1470_s12 + $0x8] sm:$0xff] %v555_v34  ;;  %1136 = vst [vmem:[%s1470_s12 + $0x18] sm:$0xff] %v678_v35  ;;  %v561_v37 = vadd.f32 %v559_v31, %v555_v34  ;;  %v686_v39 = vadd.f32 %v1138_v33, %v678_v35 }
  0xb6   : > { %v1182_v40 = vpack.c.bf16 %v561_v37, %v560_v36  ;;  %v1186_v41 = vpack.c.bf16 %v686_v39, %v685_v38 }
  0xb7   : > { %v850_v9 = vld [vmem:[%s1470_s12] sm:$0xff] (%p1413_p6)  ;;  %v854_v11 = vld [vmem:[%s1470_s12 + $0x10] sm:$0xff] (%p1413_p6) }
  0xb8   : > { %1183 = vmatprep.subr.bf16.mxu0 %v1182_v40  ;;  %1187 = vmatprep.subr.bf16.mxu1 %v1186_v41  ;;  %1147 = vst [vmem:[%s1006_s29 + $0x20] sm:$0xff] (%p1413_p6), %v850_v9  ;;  %1149 = vst [vmem:[%s1006_s29 + $0xa0] sm:$0xff] (%p1413_p6), %v854_v11 }
  0xb9   : > { %1185 = vmatpush3.bf16.msra.mxu0 %v1182_v40  ;;  %1189 = vmatpush3.bf16.msra.mxu1 %v1186_v41 }
  0xbb   : > { %v852_v10 = vld [vmem:[%s1470_s12 + $0x8] sm:$0xff] (%p1413_p6)  ;;  %v856_v12 = vld [vmem:[%s1470_s12 + $0x18] sm:$0xff] (%p1413_p6) }
  0xbc   : > { %1173 = vmatmul.mubr.msk.f32.vlgmr.msra.gmra.mrb[0].mxu0 %vm572_vm0, %v527_v42  ;;  %1180 = vmatmul.mubr.msk.f32.vlgmr.msra.gmra.mrb[0].mxu1 %vm572_vm0, %v527_v42  ;;  %1148 = vst [vmem:[%s1006_s29 + $0x30] sm:$0xff] (%p1413_p6), %v852_v10  ;;  %1150 = vst [vmem:[%s1006_s29 + $0xb0] sm:$0xff] (%p1413_p6), %v856_v12 }
 0x18f   : > { %v1174_v45 = vpop.f32.mrb[0].mxu0  ;;  %v1181_v46 = vpop.f32.mrb[0].mxu1 }
 0x190   : > { %v651_v47 = vadd.f32 %v1174_v45, %v570_v43  ;;  %v759_v48 = vadd.f32 %v1181_v46, %v570_v43  ;;  %v645_v49 = vpop.f32.mrb[1].mxu0  ;;  %v753_v50 = vpop.f32.mrb[1].mxu1 }
 0x191   : > { %v646_v51 = vadd.f32 %v645_v49, %v565_v44  ;;  %v754_v52 = vadd.f32 %v753_v50, %v565_v44 }
 0x192   : > { %v655_v53 = vmax.f32 %v651_v47, 0.0  ;;  %v763_v54 = vmax.f32 %v759_v48, 0.0 }
 0x193   : > { %v654_v55 = vmax.f32 %v646_v51, 0.0  ;;  %v762_v56 = vmax.f32 %v754_v52, 0.0 }
 0x194   : > { %657 = vst [vmem:[%s1483_s11 + $0x8] sm:$0xff] %v655_v53  ;;  %1142 = vst [vmem:[%s1483_s11 + $0x18] sm:$0xff] %v763_v54  ;;  %769 = vadd.xlane.f32.xlu0 %v763_v54  ;;  %660 = vadd.xlane.f32.xlu1 %v655_v53  ;;  %v665_v58 = vmul.f32 %v655_v53, %v655_v53  ;;  %v774_v60 = vmul.f32 %v763_v54, %v763_v54 }
 0x195   : > { %656 = vst [vmem:[%s1483_s11] sm:$0xff] %v654_v55  ;;  %1141 = vst [vmem:[%s1483_s11 + $0x10] sm:$0xff] %v762_v56  ;;  %v773_v57 = vmul.f32 %v762_v56, %v762_v56  ;;  %v664_v59 = vmul.f32 %v654_v55, %v654_v55 }
 0x198   : > { %767 = vadd.xlane.f32.xlu1 %v762_v56  ;;  %658 = vadd.xlane.f32.xlu0 %v654_v55 }
 0x19c   : > { %775 = vadd.xlane.f32.xlu1 %v773_v57  ;;  %668 = vadd.xlane.f32.xlu0 %v665_v58 }
 0x1a0   : > { %666 = vadd.xlane.f32.xlu0 %v664_v59 }
 0x1a4   : > { %777 = vadd.xlane.f32.xlu0 %v774_v60 }
 0x221   : > { %v770_v61 = vpop.xlane.xlu0 %769  ;;  %v661_v62 = vpop.xlane.xlu1 %660 }
 0x222   : > { %v772_v63 = vadd.f32 %v770_v61, %v661_v62 }
 0x224   : > { %783 = vst.msk [vmem:[%s510_s20 + $0x8] sm:$0xff] %vm781_vm1, %v772_v63 }
 0x225   : > { %v768_v0 = vpop.xlane.xlu1 %767  ;;  %v659_v1 = vpop.xlane.xlu0 %658 }
 0x226   : > { %v771_v2 = vadd.f32 %v768_v0, %v659_v1 }
 0x228   : > { %782 = vst.msk [vmem:[%s510_s20] sm:$0xff] %vm781_vm1, %v771_v2 }
 0x229   : > { %v669_v3 = vpop.xlane.xlu0 %668  ;;  %v776_v4 = vpop.xlane.xlu1 %775 }
 0x22d   : > { %v667_v5 = vpop.xlane.xlu0 %666 }
 0x22e   : > { %v779_v6 = vadd.f32 %v776_v4, %v667_v5  ;;  %810 = sbr.rel (!%p1413_p6) target bundleno = 565 (0x235), region = 124 }
 0x230   : > { %784 = vst.msk [vmem:[%s519_s21] sm:$0xff] %vm781_vm1, %v779_v6 }
 0x231   : > { %v778_v7 = vpop.xlane.xlu0 %777 }
 0x232   : > { %v780_v8 = vadd.f32 %v778_v7, %v669_v3 }
 0x234   : > { %785 = vst.msk [vmem:[%s519_s21 + $0x8] sm:$0xff] %vm781_vm1, %v780_v8 }
 0x235 PF: > { %863 = sbr.rel (!%p1413_p6) target bundleno = 572 (0x23c), region = 162  ;;  %s1159_s12 = sshll.u32 (%p1413_p6), %s1291_s16, 3  ;;  %v902_v13 = vld [vmem:[%s1483_s11] sm:$0xff] (%p1413_p6)  ;;  %v904_v14 = vld [vmem:[%s1483_s11 + $0x8] sm:$0xff] (%p1413_p6)  ;;  %v906_v15 = vld [vmem:[%s1483_s11 + $0x10] sm:$0xff] (%p1413_p6) }
 0x236   : > { %s866_s20 = sadd.s32 (%p1413_p6), %s1287_s15, %s1159_s12  ;;  %v908_v16 = vld [vmem:[%s1483_s11 + $0x18] sm:$0xff] (%p1413_p6) }
 0x237   : > { %s1153_s30 = sshll.u32 (%p1413_p6), %s866_s20, 3 }
 0x238   : > { %s868_s22 = scalar_lea.vmem (%p1413_p6), %s1552_s8, %s1153_s30 }
 0x239   : > { %903 = vst [vmem:[%s868_s22] sm:$0xff] (%p1413_p6), %v902_v13  ;;  %905 = vst [vmem:[%s868_s22 + $0x10] sm:$0xff] (%p1413_p6), %v904_v14 }
 0x23a   : > { %907 = vst [vmem:[%s868_s22 + $0x20] sm:$0xff] (%p1413_p6), %v906_v15  ;;  %909 = vst [vmem:[%s868_s22 + $0x30] sm:$0xff] (%p1413_p6), %v908_v16 }
 0x23c PF: > { %s21_s18 = sadd.s32 1, %s1303_s18   ;;  %s1559_s24 = sld [smem:[#allocation6_spill]] }
 0x23d   : > { %p18_p13 = scmp.ge.s32.totalorder %s21_s18, 6   ;;  %s1560_s13 = smov %s1283_s14 }
 0x23e   : > { %s1561_s14 = smov %s1421_s28  ;;  %s1562_s15 = smov %s1295_s6 }
 0x23f   : > { %s1563_s16 = smov %s1299_s17  ;;  %s1564_s6 = smov %s1567_s19 }
 0x240   :  { %20 = sbr.rel (!%p18_p13) target bundleno = 4 (0x4), region = 279 }
 0x242   : > { %s1565_s17 = smov %s1559_s24 }

// kernel: res2conv1d_relu_bn.5
= control target key start
LH: loop header
LB: loop body
LE: loop exit
PB: predicated region body
PF: predicated region fallthrough
CT: control target
= control target key end

     0   :  { %s1357_s13 = smov 0   ;;  %s1359_s14 = smov 0   ;;  %s1540_s0 = inlined_call_operand.vmem [shape: f32[4,64,256], index: 0, kind: input, shape index: {}]   ;;  %s1541_s1 = inlined_call_operand.vmem [shape: f32[4,16,256], index: 1, kind: input, shape index: {}]   ;;  %s1542_s2 = inlined_call_operand.vmem [shape: f32[16,1], index: 2, kind: input, shape index: {}]   ;;  %s1543_s3 = inlined_call_operand.vmem [shape: f32[16,1], index: 3, kind: input, shape index: {}]   ;;  %s1544_s4 = inlined_call_operand.vmem [shape: f32[16,16], index: 4, kind: input, shape index: {}]   ;;  %s1545_s5 = inlined_call_operand.vmem [shape: f32[16,1], index: 5, kind: input, shape index: {}]   ;;  %s1546_s6 = inlined_call_operand.vmem [shape: f32[4,64,256], index: 6, kind: input, shape index: {}, may-alias: {6,7}]   ;;  %s1547_s7 = inlined_call_operand.vmem [shape: f32[4,64,256], index: 7, kind: output, shape index: {0}, may-alias: {6,7}]   ;;  %s1548_s8 = inlined_call_operand.vmem [shape: f32[4,16,256], index: 8, kind: output, shape index: {1}]   ;;  %s1549_s9 = inlined_call_operand.vmem [shape: f32[4,16,1], index: 9, kind: output, shape index: {2}]   ;;  %s1550_s10 = inlined_call_operand.vmem [shape: f32[4,16,1], index: 10, kind: output, shape index: {3}]  }
   0x1   :  { %s1361_s15 = smov 0   ;;  %s1363_s16 = smov 0  }
   0x2   :  { %s1365_s6 = smov 0   ;;  %s1367_s17 = smov 0  }
   0x3   :  { %s1369_s18 = smov 0  }
   0x4 LB: > { %s30_s19 = sadd.s32 1, %s1291_s6  ;;  %s33_s20 = sadd.s32 1, %s1295_s17  ;;  %s1299_s18 = sphi %s1369_s18, %s21_s18   ;;  %s1295_s17 = sphi %s1367_s17, %s1561_s17   ;;  %s1291_s6 = sphi %s1365_s6, %s1560_s6   ;;  %s1287_s16 = sphi %s1363_s16, %s1559_s16   ;;  %s1283_s15 = sphi %s1361_s15, %s1558_s15   ;;  %s1279_s14 = sphi %s1359_s14, %s1557_s14   ;;  %s1275_s13 = sphi %s1357_s13, %s1556_s13  }
   0x5   : > { %p31_p0 = scmp.ge.s32.totalorder %s30_s19, 2  ;;  %s1099_s21 = sadd.s32 4294967295, %s1299_s18  }
   0x6   : > { %p49_p1 = scmp.ne.s32.totalorder %s1279_s14, %s1275_s13  ;;  %p50_p2 = scmp.eq.s32.totalorder %s1299_s18, 0 }
   0x7   : > { %s1563_s19 = smov (%p31_p0, %s30_s19), 0  ;;  %s1565_s20 = smov (!%p31_p0, %s33_s20), %s1295_s17 }
   0x8   : > { %p35_p3 = scmp.ge.s32.totalorder %s1565_s20, 2  ;;  %p193_p4 = scmp.eq.s32.totalorder %s1099_s21, 3 }
   0x9   : > { %s38_s22 = ssub.s32 %s1291_s6, %s1563_s19  ;;  %p1403_p5 = por %p50_p2, %p49_p1 }
   0xa   : > { %s1567_s20 = smov (%p35_p3, %s1565_s20), 0  ;;  %p1409_p6 = por %p193_p4, %p49_p1 }
   0xb   : > { %1553 = sst [smem:[#allocation6_spill]] %s1567_s20  ;;  %s37_s25 = ssub.s32 %s1295_s17, %s1567_s20 }
   0xc   : > { %s39_s26 = sor.u32 %s38_s22, %s37_s25  ;;  %s42_s27 = sadd.s32 1, %s1279_s14 }
   0xd   : > { %p40_p7 = scmp.eq.s32.totalorder %s39_s26, 0  ;;  %p1106_p8 = scmp.ge.s32.totalorder %s1299_s18, 4 }
   0xf   : > { %s1417_s28 = scalar_select %p40_p7, %s1279_s14, %s42_s27  }
  0x10   : > { %315 = sbr.rel (%p1106_p8) target bundleno = 39 (0x27), region = 32 }
  0x17   : > { %318 = sbr.rel (!%p1403_p5) target bundleno = 31 (0x1f), region = 36  ;;  %s320_s29 = sand.u32 (%p1403_p5), 1, %s1279_s14  }
  0x18   : > { %s1108_s30 = sshll.u32 (%p1403_p5), %s1295_s17, 5  ;;  %s1107_s11 = sshll.u32 (%p1403_p5), %s320_s29, 5 }
  0x19   : > { %s964_s12 = sadd.s32 (%p1403_p5), %s1291_s6, %s1108_s30  ;;  %s322_s26 = scalar_lea.vmem (%p1403_p5), [#allocation2], %s1107_s11 }
  0x1a   : > { %s1109_s21 = sshll.u32 (%p1403_p5), %s964_s12, 3 }
  0x1b   : > { %s966_s25 = scalar_lea.vmem (%p1403_p5), %s1540_s0, %s1109_s21 }
  0x1c   : > { %v1110_v0 = vld [vmem:[%s966_s25 + $0x20] sm:$0xff] (%p1403_p5)  ;;  %v1111_v1 = vld [vmem:[%s966_s25 + $0x30] sm:$0xff] (%p1403_p5) }
  0x1d   : > { %v1112_v2 = vld [vmem:[%s966_s25 + $0xa0] sm:$0xff] (%p1403_p5)  ;;  %363 = vst [vmem:[%s322_s26] sm:$0xff] (%p1403_p5), %v1110_v0  ;;  %365 = vst [vmem:[%s322_s26 + $0x8] sm:$0xff] (%p1403_p5), %v1111_v1  ;;  %v1113_v3 = vld [vmem:[%s966_s25 + $0xb0] sm:$0xff] (%p1403_p5) }
  0x1e   : > { %367 = vst [vmem:[%s322_s26 + $0x10] sm:$0xff] %v1112_v2  ;;  %369 = vst [vmem:[%s322_s26 + $0x18] sm:$0xff] %v1113_v3 }
  0x1f PF: > { %375 = sbr.rel (!%p1403_p5) target bundleno = 39 (0x27), region = 74  ;;  %s377_s27 = sand.u32 (%p1403_p5), 1, %s1279_s14  }
  0x20   : > { %s1151_s29 = sshll.u32 (%p1403_p5), %s1295_s17, 3  ;;  %s1114_s20 = sshll.u32 (%p1403_p5), %s377_s27, 5 }
  0x21   : > { %s382_s30 = sadd.s32 (%p1403_p5), %s1291_s6, %s1151_s29  ;;  %s379_s25 = scalar_lea.vmem (%p1403_p5), [#allocation3], %s1114_s20 }
  0x22   : > { %s1117_s12 = sshll.u32 (%p1403_p5), %s382_s30, 3 }
  0x23   : > { %s384_s11 = scalar_lea.vmem (%p1403_p5), %s1541_s1, %s1117_s12 }
  0x24   : > { %v418_v4 = vld [vmem:[%s384_s11] sm:$0xff] (%p1403_p5)  ;;  %v420_v5 = vld [vmem:[%s384_s11 + $0x10] sm:$0xff] (%p1403_p5) }
  0x25   : > { %v422_v6 = vld [vmem:[%s384_s11 + $0x20] sm:$0xff] (%p1403_p5)  ;;  %419 = vst [vmem:[%s379_s25] sm:$0xff] (%p1403_p5), %v418_v4  ;;  %421 = vst [vmem:[%s379_s25 + $0x8] sm:$0xff] (%p1403_p5), %v420_v5  ;;  %v424_v7 = vld [vmem:[%s384_s11 + $0x30] sm:$0xff] (%p1403_p5) }
  0x26   : > { %423 = vst [vmem:[%s379_s25 + $0x10] sm:$0xff] %v422_v6  ;;  %425 = vst [vmem:[%s379_s25 + $0x18] sm:$0xff] %v424_v7 }
  0x27 PF: > { %p1118_p9 = scmp.ge.s32.totalorder %s1299_s18, 1  ;;  %p430_p10 = scmp.lt.s32.totalorder %s1299_s18, 5 }
  0x29   : > { %p431_p11 = pnand %p1118_p9, %p430_p10 }
  0x2a   : > { %v524_v8 = vld [vmem:[%s1543_s3] sm:$0xff] (!%p431_p11)  ;;  %v1301_v10 = vmov (!%p431_p11), 0   ;;  %v525_v11 = vld [vmem:[%s1543_s3 + $0x8] sm:$0xff] (!%p431_p11)  ;;  %vm572_vm0 = vcmask (!%p431_p11), 130048   ;;  %s437_s29 = sand.u32 (!%p431_p11), 1, %s1275_s13   ;;  %s1123_s25 = sshll.u32 (!%p431_p11), %s1287_s16, 1 }
  0x2b   : > { %434 = sbr.rel (%p431_p11) target bundleno = 572 (0x23c), region = 112  ;;  %v522_v9 = vld [vmem:[%s1542_s2] sm:$0xff] (!%p431_p11)  ;;  %1244 = vset.pattern.permute.xlu1 (!%p431_p11), %v1301_v10  ;;  %1243 = vset.pattern.permute.xlu0 (!%p431_p11), %v1301_v10  ;;  %v523_v12 = vld [vmem:[%s1542_s2 + $0x8] sm:$0xff] (!%p431_p11)  ;;  %s1462_s20 = sshll.u32 (!%p431_p11), %s437_s29, 5  ;;  %vm781_vm1 = vcmask (!%p431_p11), 7168  }
  0x2c   : > { %546 = vperm.xlu1 (!%p431_p11), %1244, %v524_v8   ;;  %534 = vperm.xlu0 (!%p431_p11), %1243, %v522_v9   ;;  %v529_v13 = vld [vmem:[%s1545_s5 + $0x8] sm:$0xff] (!%p431_p11)  ;;  %v528_v14 = vld [vmem:[%s1545_s5] sm:$0xff] (!%p431_p11)  ;;  %s446_s30 = scalar_lea.vmem (!%p431_p11), [#allocation3], %s1462_s20  ;;  %s1466_s12 = scalar_lea.vmem (!%p431_p11), [#allocation4], %s1462_s20 }
  0x2d   : > { %v526_v15 = vld [vmem:[%s1544_s4] sm:$0xff] (!%p431_p11)  ;;  %v1131_v17 = vld [vmem:[%s446_s30 + $0x10] sm:$0xff] (!%p431_p11)  ;;  %v531_v22 = vld [vmem:[%s446_s30 + $0x8] sm:$0xff] (!%p431_p11)  ;;  %s439_s13 = scalar_lea.vmem (!%p431_p11), [#allocation2], %s1462_s20  ;;  %s1479_s11 = scalar_lea.vmem (!%p431_p11), [#allocation5], %s1462_s20 }
  0x2e   : > { %1168 = vmatprep.mubr.msk.f32.mxu0 (!%p431_p11), %vm572_vm0, %v526_v15  ;;  %1175 = vmatprep.mubr.msk.f32.mxu1 (!%p431_p11), %vm572_vm0, %v526_v15  ;;  %v530_v16 = vld [vmem:[%s446_s30] sm:$0xff] (!%p431_p11)  ;;  %v1132_v23 = vld [vmem:[%s446_s30 + $0x18] sm:$0xff] (!%p431_p11)  ;;  %v559_v31 = vld [vmem:[%s439_s13 + $0x8] sm:$0xff] (!%p431_p11)  ;;  %s505_s23 = sadd.s32 (!%p431_p11), %s1283_s15, %s1123_s25 }
  0x2f   : > { %v558_v29 = vld [vmem:[%s439_s13] sm:$0xff] (!%p431_p11)  ;;  %v1135_v32 = vld [vmem:[%s439_s13 + $0x10] sm:$0xff] (!%p431_p11)  ;;  %v1136_v33 = vld [vmem:[%s439_s13 + $0x18] sm:$0xff] (!%p431_p11)  ;;  %p506_p12 = scmp.lt.s32.totalorder (!%p431_p11), %s505_s23, 3 }
  0x30   : > { %551 = vperm.xlu1 (!%p431_p11), %1244, %v525_v11   ;;  %539 = vperm.xlu0 (!%p431_p11), %1243, %v523_v12   ;;  %v527_v42 = vld [vmem:[%s1544_s4 + $0x8] sm:$0xff] (!%p431_p11) }
  0x32   : > { %s1569_s23 = smov (!%p506_p12, %s505_s23), 3  ;;  %s1154_s22 = sshll.u32 (%p1409_p6), %s1287_s16, 5 }
  0x33   : > { %s1152_s26 = sshll.u32 %s1569_s23, 4  ;;  %s813_s25 = sadd.s32 (%p1409_p6), %s1283_s15, %s1154_s22 }
  0x34   : > { %569 = vperm.xlu1 %1244, %v529_v13   ;;  %564 = vperm.xlu0 %1243, %v528_v14   ;;  %s510_s20 = scalar_lea.vmem %s1549_s9, %s1152_s26  ;;  %s519_s21 = scalar_lea.vmem %s1550_s10, %s1152_s26 }
  0x35   : > { %s1145_s23 = sshll.u32 (%p1409_p6), %s813_s25, 3 }
  0x36   : > { %s815_s29 = scalar_lea.vmem (%p1409_p6), %s1547_s7, %s1145_s23 }
  0xab   : > { %v547_v18 = vpop.permute.xlu1 %546  ;;  %v535_v19 = vpop.permute.xlu0 %534 }
  0xac   : > { %v542_v20 = vmul.f32 %v535_v19, %v530_v16  ;;  %v675_v21 = vmul.f32 %v1131_v17, %v535_v19 }
  0xae   : > { %v554_v24 = vadd.f32 %v547_v18, %v542_v20  ;;  %v677_v25 = vadd.f32 %v675_v21, %v547_v18 }
  0xaf   : > { %v540_v26 = vpop.permute.xlu0 %539  ;;  %v552_v30 = vpop.permute.xlu1 %551 }
  0xb0   : > { %556 = vst [vmem:[%s1466_s12] sm:$0xff] %v554_v24  ;;  %1133 = vst [vmem:[%s1466_s12 + $0x10] sm:$0xff] %v677_v25  ;;  %v543_v27 = vmul.f32 %v540_v26, %v531_v22  ;;  %v676_v28 = vmul.f32 %v1132_v23, %v540_v26  ;;  %v560_v36 = vadd.f32 %v558_v29, %v554_v24 }
  0xb1   : > { %v685_v38 = vadd.f32 %v1135_v32, %v677_v25 }
  0xb2   : > { %v555_v34 = vadd.f32 %v552_v30, %v543_v27  ;;  %v678_v35 = vadd.f32 %v676_v28, %v552_v30 }
  0xb3   : > { %v570_v43 = vpop.permute.xlu1 %569  ;;  %v565_v44 = vpop.permute.xlu0 %564 }
  0xb4   : > { %557 = vst [vmem:[%s1466_s12 + $0x8] sm:$0xff] %v555_v34  ;;  %1134 = vst [vmem:[%s1466_s12 + $0x18] sm:$0xff] %v678_v35  ;;  %v561_v37 = vadd.f32 %v559_v31, %v555_v34  ;;  %v686_v39 = vadd.f32 %v1136_v33, %v678_v35 }
  0xb6   : > { %v1178_v40 = vpack.c.bf16 %v561_v37, %v560_v36  ;;  %v1182_v41 = vpack.c.bf16 %v686_v39, %v685_v38 }
  0xb7   : > { %v849_v9 = vld [vmem:[%s1466_s12] sm:$0xff] (%p1409_p6)  ;;  %v853_v11 = vld [vmem:[%s1466_s12 + $0x10] sm:$0xff] (%p1409_p6) }
  0xb8   : > { %1179 = vmatprep.subr.bf16.mxu0 %v1178_v40  ;;  %1183 = vmatprep.subr.bf16.mxu1 %v1182_v41  ;;  %850 = vst [vmem:[%s815_s29] sm:$0xff] (%p1409_p6), %v849_v9  ;;  %854 = vst [vmem:[%s815_s29 + $0x80] sm:$0xff] (%p1409_p6), %v853_v11 }
  0xb9   : > { %1181 = vmatpush3.bf16.msra.mxu0 %v1178_v40  ;;  %1185 = vmatpush3.bf16.msra.mxu1 %v1182_v41 }
  0xbb   : > { %v851_v10 = vld [vmem:[%s1466_s12 + $0x8] sm:$0xff] (%p1409_p6)  ;;  %v855_v12 = vld [vmem:[%s1466_s12 + $0x18] sm:$0xff] (%p1409_p6) }
  0xbc   : > { %1169 = vmatmul.mubr.msk.f32.vlgmr.msra.gmra.mrb[0].mxu0 %vm572_vm0, %v527_v42  ;;  %1176 = vmatmul.mubr.msk.f32.vlgmr.msra.gmra.mrb[0].mxu1 %vm572_vm0, %v527_v42  ;;  %852 = vst [vmem:[%s815_s29 + $0x10] sm:$0xff] (%p1409_p6), %v851_v10  ;;  %856 = vst [vmem:[%s815_s29 + $0x90] sm:$0xff] (%p1409_p6), %v855_v12 }
 0x18f   : > { %v1170_v45 = vpop.f32.mrb[0].mxu0  ;;  %v1177_v46 = vpop.f32.mrb[0].mxu1 }
 0x190   : > { %v651_v47 = vadd.f32 %v1170_v45, %v570_v43  ;;  %v759_v48 = vadd.f32 %v1177_v46, %v570_v43  ;;  %v645_v49 = vpop.f32.mrb[1].mxu0  ;;  %v753_v50 = vpop.f32.mrb[1].mxu1 }
 0x191   : > { %v646_v51 = vadd.f32 %v645_v49, %v565_v44  ;;  %v754_v52 = vadd.f32 %v753_v50, %v565_v44 }
 0x192   : > { %v655_v53 = vmax.f32 %v651_v47, 0.0  ;;  %v763_v54 = vmax.f32 %v759_v48, 0.0 }
 0x193   : > { %v654_v55 = vmax.f32 %v646_v51, 0.0  ;;  %v762_v56 = vmax.f32 %v754_v52, 0.0 }
 0x194   : > { %657 = vst [vmem:[%s1479_s11 + $0x8] sm:$0xff] %v655_v53  ;;  %1140 = vst [vmem:[%s1479_s11 + $0x18] sm:$0xff] %v763_v54  ;;  %769 = vadd.xlane.f32.xlu0 %v763_v54  ;;  %660 = vadd.xlane.f32.xlu1 %v655_v53  ;;  %v665_v58 = vmul.f32 %v655_v53, %v655_v53  ;;  %v774_v60 = vmul.f32 %v763_v54, %v763_v54 }
 0x195   : > { %656 = vst [vmem:[%s1479_s11] sm:$0xff] %v654_v55  ;;  %1139 = vst [vmem:[%s1479_s11 + $0x10] sm:$0xff] %v762_v56  ;;  %v773_v57 = vmul.f32 %v762_v56, %v762_v56  ;;  %v664_v59 = vmul.f32 %v654_v55, %v654_v55 }
 0x198   : > { %767 = vadd.xlane.f32.xlu1 %v762_v56  ;;  %658 = vadd.xlane.f32.xlu0 %v654_v55 }
 0x19c   : > { %775 = vadd.xlane.f32.xlu1 %v773_v57  ;;  %668 = vadd.xlane.f32.xlu0 %v665_v58 }
 0x1a0   : > { %666 = vadd.xlane.f32.xlu0 %v664_v59 }
 0x1a4   : > { %777 = vadd.xlane.f32.xlu0 %v774_v60 }
 0x221   : > { %v770_v61 = vpop.xlane.xlu0 %769  ;;  %v661_v62 = vpop.xlane.xlu1 %660 }
 0x222   : > { %v772_v63 = vadd.f32 %v770_v61, %v661_v62 }
 0x224   : > { %783 = vst.msk [vmem:[%s510_s20 + $0x8] sm:$0xff] %vm781_vm1, %v772_v63 }
 0x225   : > { %v768_v0 = vpop.xlane.xlu1 %767  ;;  %v659_v1 = vpop.xlane.xlu0 %658 }
 0x226   : > { %v771_v2 = vadd.f32 %v768_v0, %v659_v1 }
 0x228   : > { %782 = vst.msk [vmem:[%s510_s20] sm:$0xff] %vm781_vm1, %v771_v2 }
 0x229   : > { %v669_v3 = vpop.xlane.xlu0 %668  ;;  %v776_v4 = vpop.xlane.xlu1 %775 }
 0x22d   : > { %v667_v5 = vpop.xlane.xlu0 %666 }
 0x22e   : > { %v779_v6 = vadd.f32 %v776_v4, %v667_v5  ;;  %810 = sbr.rel (!%p1409_p6) target bundleno = 565 (0x235), region = 124 }
 0x230   : > { %784 = vst.msk [vmem:[%s519_s21] sm:$0xff] %vm781_vm1, %v779_v6 }
 0x231   : > { %v778_v7 = vpop.xlane.xlu0 %777 }
 0x232   : > { %v780_v8 = vadd.f32 %v778_v7, %v669_v3 }
 0x234   : > { %785 = vst.msk [vmem:[%s519_s21 + $0x8] sm:$0xff] %vm781_vm1, %v780_v8 }
 0x235 PF: > { %862 = sbr.rel (!%p1409_p6) target bundleno = 572 (0x23c), region = 162  ;;  %s1155_s12 = sshll.u32 (%p1409_p6), %s1287_s16, 3  ;;  %v901_v13 = vld [vmem:[%s1479_s11] sm:$0xff] (%p1409_p6)  ;;  %v903_v14 = vld [vmem:[%s1479_s11 + $0x8] sm:$0xff] (%p1409_p6)  ;;  %v905_v15 = vld [vmem:[%s1479_s11 + $0x10] sm:$0xff] (%p1409_p6) }
 0x236   : > { %s865_s20 = sadd.s32 (%p1409_p6), %s1283_s15, %s1155_s12  ;;  %v907_v16 = vld [vmem:[%s1479_s11 + $0x18] sm:$0xff] (%p1409_p6) }
 0x237   : > { %s1148_s30 = sshll.u32 (%p1409_p6), %s865_s20, 3 }
 0x238   : > { %s867_s22 = scalar_lea.vmem (%p1409_p6), %s1548_s8, %s1148_s30 }
 0x239   : > { %902 = vst [vmem:[%s867_s22] sm:$0xff] (%p1409_p6), %v901_v13  ;;  %904 = vst [vmem:[%s867_s22 + $0x10] sm:$0xff] (%p1409_p6), %v903_v14 }
 0x23a   : > { %906 = vst [vmem:[%s867_s22 + $0x20] sm:$0xff] (%p1409_p6), %v905_v15  ;;  %908 = vst [vmem:[%s867_s22 + $0x30] sm:$0xff] (%p1409_p6), %v907_v16 }
 0x23c PF: > { %s21_s18 = sadd.s32 1, %s1299_s18   ;;  %s1555_s24 = sld [smem:[#allocation6_spill]] }
 0x23d   : > { %p18_p13 = scmp.ge.s32.totalorder %s21_s18, 6   ;;  %s1556_s13 = smov %s1279_s14 }
 0x23e   : > { %s1557_s14 = smov %s1417_s28  ;;  %s1558_s15 = smov %s1291_s6 }
 0x23f   : > { %s1559_s16 = smov %s1295_s17  ;;  %s1560_s6 = smov %s1563_s19 }
 0x240   :  { %20 = sbr.rel (!%p18_p13) target bundleno = 4 (0x4), region = 279 }
 0x242   : > { %s1561_s17 = smov %s1555_s24 }

</bundles_post_ra>
